<compile_context>
chip_gen: v6e
topology: v6e:2x2x1
jax: 0.10.0
libtpu: 0.0.40
codegen_flags: <defaults>
</compile_context>

<pallas_src>
import math

import jax
import jax.numpy as jnp
from jax.experimental import pallas as pl
from jax.experimental.pallas import tpu as pltpu


# ------------------------- model hyper-params (small, synthetic) -------------------------
NUM_LAYERS = 2
B = 2           # batch
S = 8           # sequence length
D_MODEL = 32    # model dim
HEADS = 4
D_K = 8
D_V = 8
D_FF = 64
LN_EPS = 1e-6

N_TOK = B * S                   # flattened token count
QKV_W = 3 * HEADS * D_K         # fused q|k|v projection width (also packed-vector row width)

# row layout of the single packed bias / LayerNorm-parameter array (shape (8, QKV_W))
ROW_BQKV, ROW_B1, ROW_BO, ROW_LN1G, ROW_LN1B, ROW_LN2G, ROW_LN2B, ROW_B2 = range(8)


# --------------------------------------- kernel ------------------------------------------
def encoder_layer_kernel(x_ref, bias_ref, wqkv_ref, wo_ref, w1_ref, w2_ref, vec_ref,
                         y_ref, attn_ref):
    """One encoder layer over the whole flattened batch (no grid).

    x_ref    : (N_TOK, D_MODEL)     flattened activations
    bias_ref : (N_TOK, N_TOK)       additive attention bias (-1e18 for padded keys and
                                    cross-batch pairs, 0 otherwise)
    wqkv_ref : (D_MODEL, 3*H*D_K)   fused [Wq | Wk | Wv]
    wo_ref   : (HEADS, D_V, D_MODEL) output projection, head-major
    w1_ref   : (D_MODEL, D_FF)
    w2_ref   : (D_FF, D_MODEL)
    vec_ref  : (8, 3*H*D_K)         packed biases / LN params (ROW_* layout)
    y_ref    : (N_TOK, D_MODEL)
    attn_ref : (HEADS, N_TOK, N_TOK) softmax(QK^T); cross-batch columns are exactly 0
    """
    x = x_ref[...]                                                       # (N, D)

    # ---- fused Q/K/V projection: one MXU matmul instead of three ----
    qkv = jnp.dot(x, wqkv_ref[...], preferred_element_type=jnp.float32)
    qkv = qkv + vec_ref[ROW_BQKV:ROW_BQKV + 1, :]                        # (N, 3*H*dk)

    # ---- head-stacked views (H, N, d): stack along a new leading axis ----
    hk = HEADS * D_K
    q = jnp.stack([qkv[:, h * D_K:(h + 1) * D_K] for h in range(HEADS)], axis=0)
    k = jnp.stack([qkv[:, hk + h * D_K: hk + (h + 1) * D_K] for h in range(HEADS)], axis=0)
    v = jnp.stack([qkv[:, 2 * hk + h * D_V: 2 * hk + (h + 1) * D_V] for h in range(HEADS)], axis=0)
    q = q * (1.0 / math.sqrt(D_K))                                       # scale query (as in torch)

    # ---- attention scores, all heads & all batch elements in one batched matmul ----
    scores = jnp.einsum('hqd,hkd->hqk', q, k, preferred_element_type=jnp.float32)
    scores = scores + bias_ref[...]                                      # (H,N,N) + (N,N)

    # softmax over keys (float32); cross-batch / padded keys get exp(-1e18) == 0
    m = jnp.max(scores, axis=-1, keepdims=True)
    e = jnp.exp(scores - m)
    attn = e * pl.reciprocal(jnp.sum(e, axis=-1, keepdims=True), approx=True)
    attn_ref[...] = attn                                                 # single slab store

    # ---- context + output projection (head-batched, summed over heads: no lane concat) ----
    ctx = jnp.einsum('hqk,hkd->hqd', attn, v, preferred_element_type=jnp.float32)
    proj = jnp.einsum('hnd,hdm->hnm', ctx, wo_ref[...], preferred_element_type=jnp.float32)
    attn_out = proj[0]
    for h in range(1, HEADS):
        attn_out = attn_out + proj[h]
    attn_out = attn_out + vec_ref[ROW_BO:ROW_BO + 1, 0:D_MODEL]

    # ---- residual + LayerNorm (post-attention) ----
    h1 = attn_out + x
    mu1 = jnp.mean(h1, axis=-1, keepdims=True)
    var1 = jnp.mean((h1 - mu1) ** 2, axis=-1, keepdims=True)
    out = (h1 - mu1) * jax.lax.rsqrt(var1 + LN_EPS)
    out = out * vec_ref[ROW_LN1G:ROW_LN1G + 1, 0:D_MODEL] + vec_ref[ROW_LN1B:ROW_LN1B + 1, 0:D_MODEL]

    # ---- PositionwiseFeedForward: w2(relu(w1(LayerNorm(out)))) + out ----
    mu2 = jnp.mean(out, axis=-1, keepdims=True)
    var2 = jnp.mean((out - mu2) ** 2, axis=-1, keepdims=True)
    out_ln = (out - mu2) * jax.lax.rsqrt(var2 + LN_EPS)
    out_ln = out_ln * vec_ref[ROW_LN2G:ROW_LN2G + 1, 0:D_MODEL] + vec_ref[ROW_LN2B:ROW_LN2B + 1, 0:D_MODEL]

    inter = jnp.dot(out_ln, w1_ref[...], preferred_element_type=jnp.float32)
    inter = jnp.maximum(inter + vec_ref[ROW_B1:ROW_B1 + 1, 0:D_FF], 0.0)
    ffn = jnp.dot(inter, w2_ref[...], preferred_element_type=jnp.float32)
    ffn = ffn + vec_ref[ROW_B2:ROW_B2 + 1, 0:D_MODEL]

    y_ref[...] = (ffn + out).astype(y_ref.dtype)


# --------------------------------------- wrapper -----------------------------------------
def _layer_pallas_call(x_flat, bias, wqkv, wo_h, w1, w2, vec_pack):
    vmem = pl.BlockSpec(memory_space=pltpu.MemorySpace.VMEM)
    return pl.pallas_call(
        encoder_layer_kernel,
        out_shape=(jax.ShapeDtypeStruct((N_TOK, D_MODEL), x_flat.dtype),
                   jax.ShapeDtypeStruct((HEADS, N_TOK, N_TOK), jnp.float32)),
        in_specs=[vmem] * 7,
        out_specs=(vmem, vmem),
        # NOTE: at production sizes (D=1024, D_FF=4096) w1/w2 would need K-tiled BlockSpecs
        # and bf16 MXU feeding; at these toy sizes whole-array VMEM blocks are optimal.
    )(x_flat, bias, wqkv, wo_h, w1, w2, vec_pack)


def _pack_layer(p):
    """Fuse Q/K/V weights and pack all small bias / LN vectors into one (8, QKV_W) array."""
    wqkv = jnp.concatenate([p['wq'], p['wk'], p['wv']], axis=1)          # (D, 3*H*dk)
    bqkv = jnp.concatenate([p['bq'], p['bk'], p['bv']], axis=1)          # (1, 3*H*dk)
    wo_h = p['wo'].reshape(HEADS, D_V, D_MODEL)                          # head-major out proj

    def row(vec):
        return jnp.pad(vec, ((0, 0), (0, QKV_W - vec.shape[1])))

    vec_pack = jnp.concatenate(
        [row(bqkv), row(p['b1']), row(p['bo']),
         row(p['ln1_g']), row(p['ln1_b']),
         row(p['ln2_g']), row(p['ln2_b']), row(p['b2'])], axis=0)        # (8, QKV_W)
    return wqkv, wo_h, p['w1'], p['w2'], vec_pack


@jax.jit
def transformer_encoder(src, mask, layer_params):
    """src: (B, S, D) f32; mask: (B, 1, S) int32 (1 = padded key position).

    Returns (representations, attention_scores) like the PyTorch TransformerEncoder:
      representations  : list (per layer) of (B, S, D)
      attention_scores : list (per layer) of lists (per head) of (B, S, S)
    """
    Bq, Sq, Dq = src.shape
    n = Bq * Sq
    x = src.reshape(n, Dq)

    # additive attention bias over the flattened token axis: forbid attention to padded
    # keys and across different batch elements, so one kernel call handles the whole batch.
    tok_batch = jnp.arange(n, dtype=jnp.int32) // Sq
    cross = tok_batch[:, None] != tok_batch[None, :]
    pad_key = mask.reshape(n) != 0
    bias = jnp.where(cross | pad_key[None, :], -1e18, 0.0).astype(jnp.float32)

    representations = []
    attention_scores = []
    for p in layer_params:
        wqkv, wo_h, w1, w2, vec_pack = _pack_layer(p)
        x, attn_full = _layer_pallas_call(x, bias, wqkv, wo_h, w1, w2, vec_pack)
        representations.append(x.reshape(Bq, Sq, Dq))
        # extract per-batch diagonal blocks -> (B, H, S, S), then per-head list (XLA side)
        blocks = jnp.stack(
            [attn_full[:, b * Sq:(b + 1) * Sq, b * Sq:(b + 1) * Sq] for b in range(Bq)], axis=0)
        attention_scores.append([blocks[:, h] for h in range(HEADS)])
    return representations, attention_scores


# --------------------------------- deterministic params ----------------------------------
def init_params(key):
    def linear(k, fan_in, fan_out):
        kw, kb = jax.random.split(k)
        bound = 1.0 / math.sqrt(fan_in)
        w = jax.random.uniform(kw, (fan_in, fan_out), jnp.float32, -bound, bound)
        b = jax.random.uniform(kb, (1, fan_out), jnp.float32, -bound, bound)
        return w, b

    layers = []
    for lk in jax.random.split(key, NUM_LAYERS):
        ks = jax.random.split(lk, 6)
        wq, bq = linear(ks[0], D_MODEL, HEADS * D_K)
        wk, bk = linear(ks[1], D_MODEL, HEADS * D_K)
        wv, bv = linear(ks[2], D_MODEL, HEADS * D_V)
        wo, bo = linear(ks[3], HEADS * D_V, D_MODEL)
        w1, b1 = linear(ks[4], D_MODEL, D_FF)
        w2, b2 = linear(ks[5], D_FF, D_MODEL)
        layers.append({
            "wq": wq, "bq": bq, "wk": wk, "bk": bk, "wv": wv, "bv": bv,
            "wo": wo, "bo": bo,
            "ln1_g": jnp.ones((1, D_MODEL), jnp.float32),
            "ln1_b": jnp.zeros((1, D_MODEL), jnp.float32),
            "w1": w1, "b1": b1, "w2": w2, "b2": b2,
            "ln2_g": jnp.ones((1, D_MODEL), jnp.float32),
            "ln2_b": jnp.zeros((1, D_MODEL), jnp.float32),
        })
    return layers


# ----------------------------------- pure-JAX reference ----------------------------------
def reference_encoder(src, mask, layer_params):
    def ln(h, g, b):
        mu = jnp.mean(h, axis=-1, keepdims=True)
        var = jnp.mean((h - mu) ** 2, axis=-1, keepdims=True)
        return (h - mu) * jax.lax.rsqrt(var + LN_EPS) * g + b

    out = src
    reps, attns = [], []
    for p in layer_params:
        Bq, Sq, _ = out.shape
        q = (out @ p['wq'] + p['bq']).reshape(Bq, Sq, HEADS, D_K).transpose(0, 2, 1, 3)
        k = (out @ p['wk'] + p['bk']).reshape(Bq, Sq, HEADS, D_K).transpose(0, 2, 1, 3)
        v = (out @ p['wv'] + p['bv']).reshape(Bq, Sq, HEADS, D_V).transpose(0, 2, 1, 3)
        q = q / math.sqrt(D_K)
        scores = jnp.einsum('bhqd,bhkd->bhqk', q, k)
        scores = jnp.where(mask[:, None] != 0, -1e18, scores)
        attn = jax.nn.softmax(scores, axis=-1)
        ctx = jnp.einsum('bhqk,bhkd->bhqd', attn, v).transpose(0, 2, 1, 3).reshape(Bq, Sq, HEADS * D_V)
        attn_out = ctx @ p['wo'] + p['bo']
        o = ln(attn_out + out, p['ln1_g'], p['ln1_b'])
        inter = jnp.maximum(ln(o, p['ln2_g'], p['ln2_b']) @ p['w1'] + p['b1'], 0.0)
        out = inter @ p['w2'] + p['b2'] + o
        reps.append(out)
        attns.append(attn)
    return reps, attns


# -------------------------------------------- main ----------------------------------------
if __name__ == "__main__":
    key = jax.random.PRNGKey(0)
    kx, kp = jax.random.split(key)

    x = jax.random.normal(kx, (B, S, D_MODEL), dtype=jnp.float32)
    # pad-mask: 1 => masked key.  Batch 0 fully valid; batch 1 has last two positions padded.
    mask = jnp.zeros((B, 1, S), dtype=jnp.int32).at[1, 0, -2:].set(1)

    params = init_params(kp)

    reps, attns = transformer_encoder(x, mask, params)
    reps, attns = jax.block_until_ready((reps, attns))

    # correctness check against a pure-JAX reference (tolerance accounts for approx reciprocal)
    reps_ref, attns_ref = reference_encoder(x, mask, params)
    for l in range(NUM_LAYERS):
        assert reps[l].shape == (B, S, D_MODEL)
        assert jnp.allclose(reps[l], reps_ref[l], rtol=2e-3, atol=2e-3), f"layer {l} output mismatch"
        assert len(attns[l]) == HEADS
        for h in range(HEADS):
            assert attns[l][h].shape == (B, S, S)
            assert jnp.allclose(attns[l][h], attns_ref[l][:, h], rtol=2e-3, atol=2e-3), \
                f"layer {l} head {h} attention mismatch"

    print("KERNEL_OK")
</pallas_src>

<mosaic_0001>
module attributes {stable_mosaic.version = 11 : i64} {
  func.func @encoder_layer_kernel(%arg0: memref<16x32xf32, #tpu.memory_space<vmem>>, %arg1: memref<16x16xf32, #tpu.memory_space<vmem>>, %arg2: memref<32x96xf32, #tpu.memory_space<vmem>>, %arg3: memref<4x8x32xf32, #tpu.memory_space<vmem>>, %arg4: memref<32x64xf32, #tpu.memory_space<vmem>>, %arg5: memref<64x32xf32, #tpu.memory_space<vmem>>, %arg6: memref<8x96xf32, #tpu.memory_space<vmem>>, %arg7: memref<16x32xf32, #tpu.memory_space<vmem>>, %arg8: memref<4x16x16xf32, #tpu.memory_space<vmem>>) attributes {dimension_semantics = [], scalar_prefetch = 0 : i64, scratch_operands = 0 : i64, tpu.core_type = #tpu.core_type<tc>} {
    %c0 = arith.constant 0 : index
    %c0_0 = arith.constant 0 : index
    %0 = vector.load %arg0[%c0, %c0_0] : memref<16x32xf32, #tpu.memory_space<vmem>>, vector<16x32xf32>
    %c0_1 = arith.constant 0 : index
    %c0_2 = arith.constant 0 : index
    %1 = vector.load %arg2[%c0_1, %c0_2] : memref<32x96xf32, #tpu.memory_space<vmem>>, vector<32x96xf32>
    %cst = arith.constant dense<0.000000e+00> : vector<16x96xf32>
    %2 = tpu.matmul %0, %1, %cst {dimension_numbers = #tpu.dot_dimension_numbers<[1], [0], [0], [1], [0, 0, 1, 1], [], []>} : vector<16x32xf32>, vector<32x96xf32>, vector<16x96xf32> -> vector<16x96xf32>
    %c0_3 = arith.constant 0 : index
    %c0_4 = arith.constant 0 : index
    %3 = vector.load %arg6[%c0_3, %c0_4] : memref<8x96xf32, #tpu.memory_space<vmem>>, vector<1x96xf32>
    %4 = vector.broadcast %3 : vector<1x96xf32> to vector<16x96xf32>
    %5 = arith.addf %2, %4 : vector<16x96xf32>
    %6 = vector.extract_strided_slice %5 {offsets = [0, 0], sizes = [16, 8], strides = [1, 1]} : vector<16x96xf32> to vector<16x8xf32>
    %7 = vector.extract_strided_slice %5 {offsets = [0, 8], sizes = [16, 8], strides = [1, 1]} : vector<16x96xf32> to vector<16x8xf32>
    %8 = vector.extract_strided_slice %5 {offsets = [0, 16], sizes = [16, 8], strides = [1, 1]} : vector<16x96xf32> to vector<16x8xf32>
    %9 = vector.extract_strided_slice %5 {offsets = [0, 24], sizes = [16, 8], strides = [1, 1]} : vector<16x96xf32> to vector<16x8xf32>
    %10 = vector.shape_cast %6 : vector<16x8xf32> to vector<1x16x8xf32>
    %11 = vector.shape_cast %7 : vector<16x8xf32> to vector<1x16x8xf32>
    %12 = vector.shape_cast %8 : vector<16x8xf32> to vector<1x16x8xf32>
    %13 = vector.shape_cast %9 : vector<16x8xf32> to vector<1x16x8xf32>
    %14 = tpu.concatenate %10, %11, %12, %13 in 0 : vector<1x16x8xf32>, vector<1x16x8xf32>, vector<1x16x8xf32>, vector<1x16x8xf32> -> vector<4x16x8xf32>
    %15 = vector.extract_strided_slice %5 {offsets = [0, 32], sizes = [16, 8], strides = [1, 1]} : vector<16x96xf32> to vector<16x8xf32>
    %16 = vector.extract_strided_slice %5 {offsets = [0, 40], sizes = [16, 8], strides = [1, 1]} : vector<16x96xf32> to vector<16x8xf32>
    %17 = vector.extract_strided_slice %5 {offsets = [0, 48], sizes = [16, 8], strides = [1, 1]} : vector<16x96xf32> to vector<16x8xf32>
    %18 = vector.extract_strided_slice %5 {offsets = [0, 56], sizes = [16, 8], strides = [1, 1]} : vector<16x96xf32> to vector<16x8xf32>
    %19 = vector.shape_cast %15 : vector<16x8xf32> to vector<1x16x8xf32>
    %20 = vector.shape_cast %16 : vector<16x8xf32> to vector<1x16x8xf32>
    %21 = vector.shape_cast %17 : vector<16x8xf32> to vector<1x16x8xf32>
    %22 = vector.shape_cast %18 : vector<16x8xf32> to vector<1x16x8xf32>
    %23 = tpu.concatenate %19, %20, %21, %22 in 0 : vector<1x16x8xf32>, vector<1x16x8xf32>, vector<1x16x8xf32>, vector<1x16x8xf32> -> vector<4x16x8xf32>
    %24 = vector.extract_strided_slice %5 {offsets = [0, 64], sizes = [16, 8], strides = [1, 1]} : vector<16x96xf32> to vector<16x8xf32>
    %25 = vector.extract_strided_slice %5 {offsets = [0, 72], sizes = [16, 8], strides = [1, 1]} : vector<16x96xf32> to vector<16x8xf32>
    %26 = vector.extract_strided_slice %5 {offsets = [0, 80], sizes = [16, 8], strides = [1, 1]} : vector<16x96xf32> to vector<16x8xf32>
    %27 = vector.extract_strided_slice %5 {offsets = [0, 88], sizes = [16, 8], strides = [1, 1]} : vector<16x96xf32> to vector<16x8xf32>
    %28 = vector.shape_cast %24 : vector<16x8xf32> to vector<1x16x8xf32>
    %29 = vector.shape_cast %25 : vector<16x8xf32> to vector<1x16x8xf32>
    %30 = vector.shape_cast %26 : vector<16x8xf32> to vector<1x16x8xf32>
    %31 = vector.shape_cast %27 : vector<16x8xf32> to vector<1x16x8xf32>
    %32 = tpu.concatenate %28, %29, %30, %31 in 0 : vector<1x16x8xf32>, vector<1x16x8xf32>, vector<1x16x8xf32>, vector<1x16x8xf32> -> vector<4x16x8xf32>
    %cst_5 = arith.constant 0.353553385 : f32
    %33 = vector.broadcast %cst_5 : f32 to vector<4x16x8xf32>
    %34 = arith.mulf %14, %33 : vector<4x16x8xf32>
    "tpu.trace_start"() <{level = 10 : i32, message = "hqd,hkd->hqk"}> : () -> ()
    %cst_6 = arith.constant dense<0.000000e+00> : vector<4x16x16xf32>
    %35 = tpu.matmul %34, %23, %cst_6 {dimension_numbers = #tpu.dot_dimension_numbers<[2], [2], [1], [1], [0, 0, 0, 1, 1, 1], [0], [0]>} : vector<4x16x8xf32>, vector<4x16x8xf32>, vector<4x16x16xf32> -> vector<4x16x16xf32>
    "tpu.trace_stop"() : () -> ()
    %c0_7 = arith.constant 0 : index
    %c0_8 = arith.constant 0 : index
    %36 = vector.load %arg1[%c0_7, %c0_8] : memref<16x16xf32, #tpu.memory_space<vmem>>, vector<16x16xf32>
    %37 = vector.shape_cast %36 : vector<16x16xf32> to vector<1x16x16xf32>
    %38 = vector.broadcast %37 : vector<1x16x16xf32> to vector<4x16x16xf32>
    %39 = arith.addf %35, %38 : vector<4x16x16xf32>
    %cst_9 = arith.constant dense<0xFF800000> : vector<4x16xf32>
    %40 = vector.multi_reduction <maximumf>, %39, %cst_9 [2] : vector<4x16x16xf32> to vector<4x16xf32>
    %41 = vector.shape_cast %40 : vector<4x16xf32> to vector<4x16x1xf32>
    %42 = vector.broadcast %41 : vector<4x16x1xf32> to vector<4x16x16xf32>
    %43 = arith.subf %39, %42 : vector<4x16x16xf32>
    %44 = math.exp %43 : vector<4x16x16xf32>
    %cst_10 = arith.constant dense<0.000000e+00> : vector<4x16xf32>
    %45 = vector.multi_reduction <add>, %44, %cst_10 [2] : vector<4x16x16xf32> to vector<4x16xf32>
    %46 = vector.shape_cast %45 : vector<4x16xf32> to vector<4x16x1xf32>
    %47 = tpu.reciprocal %46 {approx = true} : vector<4x16x1xf32> -> vector<4x16x1xf32>
    %48 = vector.broadcast %47 : vector<4x16x1xf32> to vector<4x16x16xf32>
    %49 = arith.mulf %44, %48 : vector<4x16x16xf32>
    %c0_11 = arith.constant 0 : index
    %c0_12 = arith.constant 0 : index
    %c0_13 = arith.constant 0 : index
    %50 = vector.load %arg8[%c0_11, %c0_12, %c0_13] : memref<4x16x16xf32, #tpu.memory_space<vmem>>, vector<4x16x16xf32>
    tpu.vector_store %arg8[%c0_11, %c0_12, %c0_13], %49 {strides = array<i32>} : memref<4x16x16xf32, #tpu.memory_space<vmem>>, vector<4x16x16xf32>,
    "tpu.trace_start"() <{level = 10 : i32, message = "hqk,hkd->hqd"}> : () -> ()
    %cst_14 = arith.constant dense<0.000000e+00> : vector<4x16x8xf32>
    %51 = tpu.matmul %49, %32, %cst_14 {dimension_numbers = #tpu.dot_dimension_numbers<[2], [1], [1], [2], [0, 0, 0, 1, 1, 2], [0], [0]>} : vector<4x16x16xf32>, vector<4x16x8xf32>, vector<4x16x8xf32> -> vector<4x16x8xf32>
    "tpu.trace_stop"() : () -> ()
    %c0_15 = arith.constant 0 : index
    %c0_16 = arith.constant 0 : index
    %c0_17 = arith.constant 0 : index
    %52 = vector.load %arg3[%c0_15, %c0_16, %c0_17] : memref<4x8x32xf32, #tpu.memory_space<vmem>>, vector<4x8x32xf32>
    "tpu.trace_start"() <{level = 10 : i32, message = "hnd,hdm->hnm"}> : () -> ()
    %cst_18 = arith.constant dense<0.000000e+00> : vector<4x16x32xf32>
    %53 = tpu.matmul %51, %52, %cst_18 {dimension_numbers = #tpu.dot_dimension_numbers<[2], [1], [1], [2], [0, 0, 0, 1, 1, 2], [0], [0]>} : vector<4x16x8xf32>, vector<4x8x32xf32>, vector<4x16x32xf32> -> vector<4x16x32xf32>
    "tpu.trace_stop"() : () -> ()
    %54 = vector.extract_strided_slice %53 {offsets = [0, 0, 0], sizes = [1, 16, 32], strides = [1, 1, 1]} : vector<4x16x32xf32> to vector<1x16x32xf32>
    %55 = vector.shape_cast %54 : vector<1x16x32xf32> to vector<16x32xf32>
    %56 = vector.extract_strided_slice %53 {offsets = [1, 0, 0], sizes = [1, 16, 32], strides = [1, 1, 1]} : vector<4x16x32xf32> to vector<1x16x32xf32>
    %57 = vector.shape_cast %56 : vector<1x16x32xf32> to vector<16x32xf32>
    %58 = arith.addf %55, %57 : vector<16x32xf32>
    %59 = vector.extract_strided_slice %53 {offsets = [2, 0, 0], sizes = [1, 16, 32], strides = [1, 1, 1]} : vector<4x16x32xf32> to vector<1x16x32xf32>
    %60 = vector.shape_cast %59 : vector<1x16x32xf32> to vector<16x32xf32>
    %61 = arith.addf %58, %60 : vector<16x32xf32>
    %62 = vector.extract_strided_slice %53 {offsets = [3, 0, 0], sizes = [1, 16, 32], strides = [1, 1, 1]} : vector<4x16x32xf32> to vector<1x16x32xf32>
    %63 = vector.shape_cast %62 : vector<1x16x32xf32> to vector<16x32xf32>
    %64 = arith.addf %61, %63 : vector<16x32xf32>
    %c2 = arith.constant 2 : index
    %c0_19 = arith.constant 0 : index
    %65 = vector.load %arg6[%c2, %c0_19] : memref<8x96xf32, #tpu.memory_space<vmem>>, vector<1x32xf32>
    %66 = vector.broadcast %65 : vector<1x32xf32> to vector<16x32xf32>
    %67 = arith.addf %64, %66 : vector<16x32xf32>
    %68 = arith.addf %67, %0 : vector<16x32xf32>
    %cst_20 = arith.constant dense<0.000000e+00> : vector<16xf32>
    %69 = vector.multi_reduction <add>, %68, %cst_20 [1] : vector<16x32xf32> to vector<16xf32>
    %70 = vector.shape_cast %69 : vector<16xf32> to vector<16x1xf32>
    %cst_21 = arith.constant 3.200000e+01 : f32
    %71 = vector.broadcast %cst_21 : f32 to vector<16x1xf32>
    %72 = arith.divf %70, %71 : vector<16x1xf32>
    %73 = vector.broadcast %72 : vector<16x1xf32> to vector<16x32xf32>
    %74 = arith.subf %68, %73 : vector<16x32xf32>
    %75 = arith.mulf %74, %74 : vector<16x32xf32>
    %cst_22 = arith.constant dense<0.000000e+00> : vector<16xf32>
    %76 = vector.multi_reduction <add>, %75, %cst_22 [1] : vector<16x32xf32> to vector<16xf32>
    %77 = vector.shape_cast %76 : vector<16xf32> to vector<16x1xf32>
    %cst_23 = arith.constant 3.200000e+01 : f32
    %78 = vector.broadcast %cst_23 : f32 to vector<16x1xf32>
    %79 = arith.divf %77, %78 : vector<16x1xf32>
    %80 = vector.broadcast %72 : vector<16x1xf32> to vector<16x32xf32>
    %81 = arith.subf %68, %80 : vector<16x32xf32>
    %cst_24 = arith.constant 9.99999997E-7 : f32
    %82 = vector.broadcast %cst_24 : f32 to vector<16x1xf32>
    %83 = arith.addf %79, %82 : vector<16x1xf32>
    %84 = math.rsqrt %83 : vector<16x1xf32>
    %85 = vector.broadcast %84 : vector<16x1xf32> to vector<16x32xf32>
    %86 = arith.mulf %81, %85 : vector<16x32xf32>
    %c3 = arith.constant 3 : index
    %c0_25 = arith.constant 0 : index
    %87 = vector.load %arg6[%c3, %c0_25] : memref<8x96xf32, #tpu.memory_space<vmem>>, vector<1x32xf32>
    %88 = vector.broadcast %87 : vector<1x32xf32> to vector<16x32xf32>
    %89 = arith.mulf %86, %88 : vector<16x32xf32>
    %c4 = arith.constant 4 : index
    %c0_26 = arith.constant 0 : index
    %90 = vector.load %arg6[%c4, %c0_26] : memref<8x96xf32, #tpu.memory_space<vmem>>, vector<1x32xf32>
    %91 = vector.broadcast %90 : vector<1x32xf32> to vector<16x32xf32>
    %92 = arith.addf %89, %91 : vector<16x32xf32>
    %cst_27 = arith.constant dense<0.000000e+00> : vector<16xf32>
    %93 = vector.multi_reduction <add>, %92, %cst_27 [1] : vector<16x32xf32> to vector<16xf32>
    %94 = vector.shape_cast %93 : vector<16xf32> to vector<16x1xf32>
    %cst_28 = arith.constant 3.200000e+01 : f32
    %95 = vector.broadcast %cst_28 : f32 to vector<16x1xf32>
    %96 = arith.divf %94, %95 : vector<16x1xf32>
    %97 = vector.broadcast %96 : vector<16x1xf32> to vector<16x32xf32>
    %98 = arith.subf %92, %97 : vector<16x32xf32>
    %99 = arith.mulf %98, %98 : vector<16x32xf32>
    %cst_29 = arith.constant dense<0.000000e+00> : vector<16xf32>
    %100 = vector.multi_reduction <add>, %99, %cst_29 [1] : vector<16x32xf32> to vector<16xf32>
    %101 = vector.shape_cast %100 : vector<16xf32> to vector<16x1xf32>
    %cst_30 = arith.constant 3.200000e+01 : f32
    %102 = vector.broadcast %cst_30 : f32 to vector<16x1xf32>
    %103 = arith.divf %101, %102 : vector<16x1xf32>
    %104 = vector.broadcast %96 : vector<16x1xf32> to vector<16x32xf32>
    %105 = arith.subf %92, %104 : vector<16x32xf32>
    %cst_31 = arith.constant 9.99999997E-7 : f32
    %106 = vector.broadcast %cst_31 : f32 to vector<16x1xf32>
    %107 = arith.addf %103, %106 : vector<16x1xf32>
    %108 = math.rsqrt %107 : vector<16x1xf32>
    %109 = vector.broadcast %108 : vector<16x1xf32> to vector<16x32xf32>
    %110 = arith.mulf %105, %109 : vector<16x32xf32>
    %c5 = arith.constant 5 : index
    %c0_32 = arith.constant 0 : index
    %111 = vector.load %arg6[%c5, %c0_32] : memref<8x96xf32, #tpu.memory_space<vmem>>, vector<1x32xf32>
    %112 = vector.broadcast %111 : vector<1x32xf32> to vector<16x32xf32>
    %113 = arith.mulf %110, %112 : vector<16x32xf32>
    %c6 = arith.constant 6 : index
    %c0_33 = arith.constant 0 : index
    %114 = vector.load %arg6[%c6, %c0_33] : memref<8x96xf32, #tpu.memory_space<vmem>>, vector<1x32xf32>
    %115 = vector.broadcast %114 : vector<1x32xf32> to vector<16x32xf32>
    %116 = arith.addf %113, %115 : vector<16x32xf32>
    %c0_34 = arith.constant 0 : index
    %c0_35 = arith.constant 0 : index
    %117 = vector.load %arg4[%c0_34, %c0_35] : memref<32x64xf32, #tpu.memory_space<vmem>>, vector<32x64xf32>
    %cst_36 = arith.constant dense<0.000000e+00> : vector<16x64xf32>
    %118 = tpu.matmul %116, %117, %cst_36 {dimension_numbers = #tpu.dot_dimension_numbers<[1], [0], [0], [1], [0, 0, 1, 1], [], []>} : vector<16x32xf32>, vector<32x64xf32>, vector<16x64xf32> -> vector<16x64xf32>
    %c1 = arith.constant 1 : index
    %c0_37 = arith.constant 0 : index
    %119 = vector.load %arg6[%c1, %c0_37] : memref<8x96xf32, #tpu.memory_space<vmem>>, vector<1x64xf32>
    %120 = vector.broadcast %119 : vector<1x64xf32> to vector<16x64xf32>
    %121 = arith.addf %118, %120 : vector<16x64xf32>
    %cst_38 = arith.constant 0.000000e+00 : f32
    %122 = vector.broadcast %cst_38 : f32 to vector<16x64xf32>
    %123 = arith.maximumf %121, %122 : vector<16x64xf32>
    %c0_39 = arith.constant 0 : index
    %c0_40 = arith.constant 0 : index
    %124 = vector.load %arg5[%c0_39, %c0_40] : memref<64x32xf32, #tpu.memory_space<vmem>>, vector<64x32xf32>
    %cst_41 = arith.constant dense<0.000000e+00> : vector<16x32xf32>
    %125 = tpu.matmul %123, %124, %cst_41 {dimension_numbers = #tpu.dot_dimension_numbers<[1], [0], [0], [1], [0, 0, 1, 1], [], []>} : vector<16x64xf32>, vector<64x32xf32>, vector<16x32xf32> -> vector<16x32xf32>
    %c7 = arith.constant 7 : index
    %c0_42 = arith.constant 0 : index
    %126 = vector.load %arg6[%c7, %c0_42] : memref<8x96xf32, #tpu.memory_space<vmem>>, vector<1x32xf32>
    %127 = vector.broadcast %126 : vector<1x32xf32> to vector<16x32xf32>
    %128 = arith.addf %125, %127 : vector<16x32xf32>
    %129 = arith.addf %128, %92 : vector<16x32xf32>
    %c0_43 = arith.constant 0 : index
    %c0_44 = arith.constant 0 : index
    %130 = vector.load %arg7[%c0_43, %c0_44] : memref<16x32xf32, #tpu.memory_space<vmem>>, vector<16x32xf32>
    tpu.vector_store %arg7[%c0_43, %c0_44], %129 {strides = array<i32>} : memref<16x32xf32, #tpu.memory_space<vmem>>, vector<16x32xf32>,
    return
  }
}

module attributes {stable_mosaic.version = 11 : i64} {
  func.func @encoder_layer_kernel(%arg0: memref<16x32xf32, #tpu.memory_space<vmem>>, %arg1: memref<16x16xf32, #tpu.memory_space<vmem>>, %arg2: memref<32x96xf32, #tpu.memory_space<vmem>>, %arg3: memref<4x8x32xf32, #tpu.memory_space<vmem>>, %arg4: memref<32x64xf32, #tpu.memory_space<vmem>>, %arg5: memref<64x32xf32, #tpu.memory_space<vmem>>, %arg6: memref<8x96xf32, #tpu.memory_space<vmem>>, %arg7: memref<16x32xf32, #tpu.memory_space<vmem>>, %arg8: memref<4x16x16xf32, #tpu.memory_space<vmem>>) attributes {dimension_semantics = [], scalar_prefetch = 0 : i64, scratch_operands = 0 : i64, tpu.core_type = #tpu.core_type<tc>} {
    %c0 = arith.constant 0 : index
    %c0_0 = arith.constant 0 : index
    %0 = vector.load %arg0[%c0, %c0_0] : memref<16x32xf32, #tpu.memory_space<vmem>>, vector<16x32xf32>
    %c0_1 = arith.constant 0 : index
    %c0_2 = arith.constant 0 : index
    %1 = vector.load %arg2[%c0_1, %c0_2] : memref<32x96xf32, #tpu.memory_space<vmem>>, vector<32x96xf32>
    %cst = arith.constant dense<0.000000e+00> : vector<16x96xf32>
    %2 = tpu.matmul %0, %1, %cst {dimension_numbers = #tpu.dot_dimension_numbers<[1], [0], [0], [1], [0, 0, 1, 1], [], []>} : vector<16x32xf32>, vector<32x96xf32>, vector<16x96xf32> -> vector<16x96xf32>
    %c0_3 = arith.constant 0 : index
    %c0_4 = arith.constant 0 : index
    %3 = vector.load %arg6[%c0_3, %c0_4] : memref<8x96xf32, #tpu.memory_space<vmem>>, vector<1x96xf32>
    %4 = vector.broadcast %3 : vector<1x96xf32> to vector<16x96xf32>
    %5 = arith.addf %2, %4 : vector<16x96xf32>
    %6 = vector.extract_strided_slice %5 {offsets = [0, 0], sizes = [16, 8], strides = [1, 1]} : vector<16x96xf32> to vector<16x8xf32>
    %7 = vector.extract_strided_slice %5 {offsets = [0, 8], sizes = [16, 8], strides = [1, 1]} : vector<16x96xf32> to vector<16x8xf32>
    %8 = vector.extract_strided_slice %5 {offsets = [0, 16], sizes = [16, 8], strides = [1, 1]} : vector<16x96xf32> to vector<16x8xf32>
    %9 = vector.extract_strided_slice %5 {offsets = [0, 24], sizes = [16, 8], strides = [1, 1]} : vector<16x96xf32> to vector<16x8xf32>
    %10 = vector.shape_cast %6 : vector<16x8xf32> to vector<1x16x8xf32>
    %11 = vector.shape_cast %7 : vector<16x8xf32> to vector<1x16x8xf32>
    %12 = vector.shape_cast %8 : vector<16x8xf32> to vector<1x16x8xf32>
    %13 = vector.shape_cast %9 : vector<16x8xf32> to vector<1x16x8xf32>
    %14 = tpu.concatenate %10, %11, %12, %13 in 0 : vector<1x16x8xf32>, vector<1x16x8xf32>, vector<1x16x8xf32>, vector<1x16x8xf32> -> vector<4x16x8xf32>
    %15 = vector.extract_strided_slice %5 {offsets = [0, 32], sizes = [16, 8], strides = [1, 1]} : vector<16x96xf32> to vector<16x8xf32>
    %16 = vector.extract_strided_slice %5 {offsets = [0, 40], sizes = [16, 8], strides = [1, 1]} : vector<16x96xf32> to vector<16x8xf32>
    %17 = vector.extract_strided_slice %5 {offsets = [0, 48], sizes = [16, 8], strides = [1, 1]} : vector<16x96xf32> to vector<16x8xf32>
    %18 = vector.extract_strided_slice %5 {offsets = [0, 56], sizes = [16, 8], strides = [1, 1]} : vector<16x96xf32> to vector<16x8xf32>
    %19 = vector.shape_cast %15 : vector<16x8xf32> to vector<1x16x8xf32>
    %20 = vector.shape_cast %16 : vector<16x8xf32> to vector<1x16x8xf32>
    %21 = vector.shape_cast %17 : vector<16x8xf32> to vector<1x16x8xf32>
    %22 = vector.shape_cast %18 : vector<16x8xf32> to vector<1x16x8xf32>
    %23 = tpu.concatenate %19, %20, %21, %22 in 0 : vector<1x16x8xf32>, vector<1x16x8xf32>, vector<1x16x8xf32>, vector<1x16x8xf32> -> vector<4x16x8xf32>
    %24 = vector.extract_strided_slice %5 {offsets = [0, 64], sizes = [16, 8], strides = [1, 1]} : vector<16x96xf32> to vector<16x8xf32>
    %25 = vector.extract_strided_slice %5 {offsets = [0, 72], sizes = [16, 8], strides = [1, 1]} : vector<16x96xf32> to vector<16x8xf32>
    %26 = vector.extract_strided_slice %5 {offsets = [0, 80], sizes = [16, 8], strides = [1, 1]} : vector<16x96xf32> to vector<16x8xf32>
    %27 = vector.extract_strided_slice %5 {offsets = [0, 88], sizes = [16, 8], strides = [1, 1]} : vector<16x96xf32> to vector<16x8xf32>
    %28 = vector.shape_cast %24 : vector<16x8xf32> to vector<1x16x8xf32>
    %29 = vector.shape_cast %25 : vector<16x8xf32> to vector<1x16x8xf32>
    %30 = vector.shape_cast %26 : vector<16x8xf32> to vector<1x16x8xf32>
    %31 = vector.shape_cast %27 : vector<16x8xf32> to vector<1x16x8xf32>
    %32 = tpu.concatenate %28, %29, %30, %31 in 0 : vector<1x16x8xf32>, vector<1x16x8xf32>, vector<1x16x8xf32>, vector<1x16x8xf32> -> vector<4x16x8xf32>
    %cst_5 = arith.constant 0.353553385 : f32
    %33 = vector.broadcast %cst_5 : f32 to vector<4x16x8xf32>
    %34 = arith.mulf %14, %33 : vector<4x16x8xf32>
    "tpu.trace_start"() <{level = 10 : i32, message = "hqd,hkd->hqk"}> : () -> ()
    %cst_6 = arith.constant dense<0.000000e+00> : vector<4x16x16xf32>
    %35 = tpu.matmul %34, %23, %cst_6 {dimension_numbers = #tpu.dot_dimension_numbers<[2], [2], [1], [1], [0, 0, 0, 1, 1, 1], [0], [0]>} : vector<4x16x8xf32>, vector<4x16x8xf32>, vector<4x16x16xf32> -> vector<4x16x16xf32>
    "tpu.trace_stop"() : () -> ()
    %c0_7 = arith.constant 0 : index
    %c0_8 = arith.constant 0 : index
    %36 = vector.load %arg1[%c0_7, %c0_8] : memref<16x16xf32, #tpu.memory_space<vmem>>, vector<16x16xf32>
    %37 = vector.shape_cast %36 : vector<16x16xf32> to vector<1x16x16xf32>
    %38 = vector.broadcast %37 : vector<1x16x16xf32> to vector<4x16x16xf32>
    %39 = arith.addf %35, %38 : vector<4x16x16xf32>
    %cst_9 = arith.constant dense<0xFF800000> : vector<4x16xf32>
    %40 = vector.multi_reduction <maximumf>, %39, %cst_9 [2] : vector<4x16x16xf32> to vector<4x16xf32>
    %41 = vector.shape_cast %40 : vector<4x16xf32> to vector<4x16x1xf32>
    %42 = vector.broadcast %41 : vector<4x16x1xf32> to vector<4x16x16xf32>
    %43 = arith.subf %39, %42 : vector<4x16x16xf32>
    %44 = math.exp %43 : vector<4x16x16xf32>
    %cst_10 = arith.constant dense<0.000000e+00> : vector<4x16xf32>
    %45 = vector.multi_reduction <add>, %44, %cst_10 [2] : vector<4x16x16xf32> to vector<4x16xf32>
    %46 = vector.shape_cast %45 : vector<4x16xf32> to vector<4x16x1xf32>
    %47 = tpu.reciprocal %46 {approx = true} : vector<4x16x1xf32> -> vector<4x16x1xf32>
    %48 = vector.broadcast %47 : vector<4x16x1xf32> to vector<4x16x16xf32>
    %49 = arith.mulf %44, %48 : vector<4x16x16xf32>
    %c0_11 = arith.constant 0 : index
    %c0_12 = arith.constant 0 : index
    %c0_13 = arith.constant 0 : index
    %50 = vector.load %arg8[%c0_11, %c0_12, %c0_13] : memref<4x16x16xf32, #tpu.memory_space<vmem>>, vector<4x16x16xf32>
    tpu.vector_store %arg8[%c0_11, %c0_12, %c0_13], %49 {strides = array<i32>} : memref<4x16x16xf32, #tpu.memory_space<vmem>>, vector<4x16x16xf32>,
    "tpu.trace_start"() <{level = 10 : i32, message = "hqk,hkd->hqd"}> : () -> ()
    %cst_14 = arith.constant dense<0.000000e+00> : vector<4x16x8xf32>
    %51 = tpu.matmul %49, %32, %cst_14 {dimension_numbers = #tpu.dot_dimension_numbers<[2], [1], [1], [2], [0, 0, 0, 1, 1, 2], [0], [0]>} : vector<4x16x16xf32>, vector<4x16x8xf32>, vector<4x16x8xf32> -> vector<4x16x8xf32>
    "tpu.trace_stop"() : () -> ()
    %c0_15 = arith.constant 0 : index
    %c0_16 = arith.constant 0 : index
    %c0_17 = arith.constant 0 : index
    %52 = vector.load %arg3[%c0_15, %c0_16, %c0_17] : memref<4x8x32xf32, #tpu.memory_space<vmem>>, vector<4x8x32xf32>
    "tpu.trace_start"() <{level = 10 : i32, message = "hnd,hdm->hnm"}> : () -> ()
    %cst_18 = arith.constant dense<0.000000e+00> : vector<4x16x32xf32>
    %53 = tpu.matmul %51, %52, %cst_18 {dimension_numbers = #tpu.dot_dimension_numbers<[2], [1], [1], [2], [0, 0, 0, 1, 1, 2], [0], [0]>} : vector<4x16x8xf32>, vector<4x8x32xf32>, vector<4x16x32xf32> -> vector<4x16x32xf32>
    "tpu.trace_stop"() : () -> ()
    %54 = vector.extract_strided_slice %53 {offsets = [0, 0, 0], sizes = [1, 16, 32], strides = [1, 1, 1]} : vector<4x16x32xf32> to vector<1x16x32xf32>
    %55 = vector.shape_cast %54 : vector<1x16x32xf32> to vector<16x32xf32>
    %56 = vector.extract_strided_slice %53 {offsets = [1, 0, 0], sizes = [1, 16, 32], strides = [1, 1, 1]} : vector<4x16x32xf32> to vector<1x16x32xf32>
    %57 = vector.shape_cast %56 : vector<1x16x32xf32> to vector<16x32xf32>
    %58 = arith.addf %55, %57 : vector<16x32xf32>
    %59 = vector.extract_strided_slice %53 {offsets = [2, 0, 0], sizes = [1, 16, 32], strides = [1, 1, 1]} : vector<4x16x32xf32> to vector<1x16x32xf32>
    %60 = vector.shape_cast %59 : vector<1x16x32xf32> to vector<16x32xf32>
    %61 = arith.addf %58, %60 : vector<16x32xf32>
    %62 = vector.extract_strided_slice %53 {offsets = [3, 0, 0], sizes = [1, 16, 32], strides = [1, 1, 1]} : vector<4x16x32xf32> to vector<1x16x32xf32>
    %63 = vector.shape_cast %62 : vector<1x16x32xf32> to vector<16x32xf32>
    %64 = arith.addf %61, %63 : vector<16x32xf32>
    %c2 = arith.constant 2 : index
    %c0_19 = arith.constant 0 : index
    %65 = vector.load %arg6[%c2, %c0_19] : memref<8x96xf32, #tpu.memory_space<vmem>>, vector<1x32xf32>
    %66 = vector.broadcast %65 : vector<1x32xf32> to vector<16x32xf32>
    %67 = arith.addf %64, %66 : vector<16x32xf32>
    %68 = arith.addf %67, %0 : vector<16x32xf32>
    %cst_20 = arith.constant dense<0.000000e+00> : vector<16xf32>
    %69 = vector.multi_reduction <add>, %68, %cst_20 [1] : vector<16x32xf32> to vector<16xf32>
    %70 = vector.shape_cast %69 : vector<16xf32> to vector<16x1xf32>
    %cst_21 = arith.constant 3.200000e+01 : f32
    %71 = vector.broadcast %cst_21 : f32 to vector<16x1xf32>
    %72 = arith.divf %70, %71 : vector<16x1xf32>
    %73 = vector.broadcast %72 : vector<16x1xf32> to vector<16x32xf32>
    %74 = arith.subf %68, %73 : vector<16x32xf32>
    %75 = arith.mulf %74, %74 : vector<16x32xf32>
    %cst_22 = arith.constant dense<0.000000e+00> : vector<16xf32>
    %76 = vector.multi_reduction <add>, %75, %cst_22 [1] : vector<16x32xf32> to vector<16xf32>
    %77 = vector.shape_cast %76 : vector<16xf32> to vector<16x1xf32>
    %cst_23 = arith.constant 3.200000e+01 : f32
    %78 = vector.broadcast %cst_23 : f32 to vector<16x1xf32>
    %79 = arith.divf %77, %78 : vector<16x1xf32>
    %80 = vector.broadcast %72 : vector<16x1xf32> to vector<16x32xf32>
    %81 = arith.subf %68, %80 : vector<16x32xf32>
    %cst_24 = arith.constant 9.99999997E-7 : f32
    %82 = vector.broadcast %cst_24 : f32 to vector<16x1xf32>
    %83 = arith.addf %79, %82 : vector<16x1xf32>
    %84 = math.rsqrt %83 : vector<16x1xf32>
    %85 = vector.broadcast %84 : vector<16x1xf32> to vector<16x32xf32>
    %86 = arith.mulf %81, %85 : vector<16x32xf32>
    %c3 = arith.constant 3 : index
    %c0_25 = arith.constant 0 : index
    %87 = vector.load %arg6[%c3, %c0_25] : memref<8x96xf32, #tpu.memory_space<vmem>>, vector<1x32xf32>
    %88 = vector.broadcast %87 : vector<1x32xf32> to vector<16x32xf32>
    %89 = arith.mulf %86, %88 : vector<16x32xf32>
    %c4 = arith.constant 4 : index
    %c0_26 = arith.constant 0 : index
    %90 = vector.load %arg6[%c4, %c0_26] : memref<8x96xf32, #tpu.memory_space<vmem>>, vector<1x32xf32>
    %91 = vector.broadcast %90 : vector<1x32xf32> to vector<16x32xf32>
    %92 = arith.addf %89, %91 : vector<16x32xf32>
    %cst_27 = arith.constant dense<0.000000e+00> : vector<16xf32>
    %93 = vector.multi_reduction <add>, %92, %cst_27 [1] : vector<16x32xf32> to vector<16xf32>
    %94 = vector.shape_cast %93 : vector<16xf32> to vector<16x1xf32>
    %cst_28 = arith.constant 3.200000e+01 : f32
    %95 = vector.broadcast %cst_28 : f32 to vector<16x1xf32>
    %96 = arith.divf %94, %95 : vector<16x1xf32>
    %97 = vector.broadcast %96 : vector<16x1xf32> to vector<16x32xf32>
    %98 = arith.subf %92, %97 : vector<16x32xf32>
    %99 = arith.mulf %98, %98 : vector<16x32xf32>
    %cst_29 = arith.constant dense<0.000000e+00> : vector<16xf32>
    %100 = vector.multi_reduction <add>, %99, %cst_29 [1] : vector<16x32xf32> to vector<16xf32>
    %101 = vector.shape_cast %100 : vector<16xf32> to vector<16x1xf32>
    %cst_30 = arith.constant 3.200000e+01 : f32
    %102 = vector.broadcast %cst_30 : f32 to vector<16x1xf32>
    %103 = arith.divf %101, %102 : vector<16x1xf32>
    %104 = vector.broadcast %96 : vector<16x1xf32> to vector<16x32xf32>
    %105 = arith.subf %92, %104 : vector<16x32xf32>
    %cst_31 = arith.constant 9.99999997E-7 : f32
    %106 = vector.broadcast %cst_31 : f32 to vector<16x1xf32>
    %107 = arith.addf %103, %106 : vector<16x1xf32>
    %108 = math.rsqrt %107 : vector<16x1xf32>
    %109 = vector.broadcast %108 : vector<16x1xf32> to vector<16x32xf32>
    %110 = arith.mulf %105, %109 : vector<16x32xf32>
    %c5 = arith.constant 5 : index
    %c0_32 = arith.constant 0 : index
    %111 = vector.load %arg6[%c5, %c0_32] : memref<8x96xf32, #tpu.memory_space<vmem>>, vector<1x32xf32>
    %112 = vector.broadcast %111 : vector<1x32xf32> to vector<16x32xf32>
    %113 = arith.mulf %110, %112 : vector<16x32xf32>
    %c6 = arith.constant 6 : index
    %c0_33 = arith.constant 0 : index
    %114 = vector.load %arg6[%c6, %c0_33] : memref<8x96xf32, #tpu.memory_space<vmem>>, vector<1x32xf32>
    %115 = vector.broadcast %114 : vector<1x32xf32> to vector<16x32xf32>
    %116 = arith.addf %113, %115 : vector<16x32xf32>
    %c0_34 = arith.constant 0 : index
    %c0_35 = arith.constant 0 : index
    %117 = vector.load %arg4[%c0_34, %c0_35] : memref<32x64xf32, #tpu.memory_space<vmem>>, vector<32x64xf32>
    %cst_36 = arith.constant dense<0.000000e+00> : vector<16x64xf32>
    %118 = tpu.matmul %116, %117, %cst_36 {dimension_numbers = #tpu.dot_dimension_numbers<[1], [0], [0], [1], [0, 0, 1, 1], [], []>} : vector<16x32xf32>, vector<32x64xf32>, vector<16x64xf32> -> vector<16x64xf32>
    %c1 = arith.constant 1 : index
    %c0_37 = arith.constant 0 : index
    %119 = vector.load %arg6[%c1, %c0_37] : memref<8x96xf32, #tpu.memory_space<vmem>>, vector<1x64xf32>
    %120 = vector.broadcast %119 : vector<1x64xf32> to vector<16x64xf32>
    %121 = arith.addf %118, %120 : vector<16x64xf32>
    %cst_38 = arith.constant 0.000000e+00 : f32
    %122 = vector.broadcast %cst_38 : f32 to vector<16x64xf32>
    %123 = arith.maximumf %121, %122 : vector<16x64xf32>
    %c0_39 = arith.constant 0 : index
    %c0_40 = arith.constant 0 : index
    %124 = vector.load %arg5[%c0_39, %c0_40] : memref<64x32xf32, #tpu.memory_space<vmem>>, vector<64x32xf32>
    %cst_41 = arith.constant dense<0.000000e+00> : vector<16x32xf32>
    %125 = tpu.matmul %123, %124, %cst_41 {dimension_numbers = #tpu.dot_dimension_numbers<[1], [0], [0], [1], [0, 0, 1, 1], [], []>} : vector<16x64xf32>, vector<64x32xf32>, vector<16x32xf32> -> vector<16x32xf32>
    %c7 = arith.constant 7 : index
    %c0_42 = arith.constant 0 : index
    %126 = vector.load %arg6[%c7, %c0_42] : memref<8x96xf32, #tpu.memory_space<vmem>>, vector<1x32xf32>
    %127 = vector.broadcast %126 : vector<1x32xf32> to vector<16x32xf32>
    %128 = arith.addf %125, %127 : vector<16x32xf32>
    %129 = arith.addf %128, %92 : vector<16x32xf32>
    %c0_43 = arith.constant 0 : index
    %c0_44 = arith.constant 0 : index
    %130 = vector.load %arg7[%c0_43, %c0_44] : memref<16x32xf32, #tpu.memory_space<vmem>>, vector<16x32xf32>
    tpu.vector_store %arg7[%c0_43, %c0_44], %129 {strides = array<i32>} : memref<16x32xf32, #tpu.memory_space<vmem>>, vector<16x32xf32>,
    return
  }
}

</mosaic_0001>

<bundles_post_ra>
// kernel: transformer_encoder.3
= control target key start
LH: loop header
LB: loop body
LE: loop exit
PB: predicated region body
PF: predicated region fallthrough
CT: control target
= control target key end

     0   :  { %vm40_vm0 = vcmask 261120   ;;  %s2226_s0 = inlined_call_operand.vmem [shape: f32[16,32], index: 0, kind: input, shape index: {}]   ;;  %s2227_s1 = inlined_call_operand.vmem [shape: f32[16,16], index: 1, kind: input, shape index: {}]   ;;  %s2228_s2 = inlined_call_operand.vmem [shape: f32[32,96], index: 2, kind: input, shape index: {}]   ;;  %s2229_s3 = inlined_call_operand.vmem [shape: f32[4,8,32], index: 3, kind: input, shape index: {}]   ;;  %s2230_s4 = inlined_call_operand.vmem [shape: f32[32,64], index: 4, kind: input, shape index: {}]   ;;  %s2231_s5 = inlined_call_operand.vmem [shape: f32[64,32], index: 5, kind: input, shape index: {}]   ;;  %s2232_s6 = inlined_call_operand.vmem [shape: f32[8,96], index: 6, kind: input, shape index: {}]   ;;  %s2233_s7 = inlined_call_operand.hbm [shape: f32[16,32], index: 7, kind: output, shape index: {0}]   ;;  %s2234_s8 = inlined_call_operand.vmem [shape: f32[4,16,16], index: 8, kind: output, shape index: {1}]  }
   0x1   :  { %v34_v0 = vld [vmem:[%s2228_s2 + $0x18] sm:$0xff]  ;;  %v33_v1 = vld [vmem:[%s2228_s2 + $0x10] sm:$0xff]  ;;  %v1950_v2 = vld [vmem:[%s2226_s0] sm:$0xff] }
   0x2   :  { %1701 = vmatprep.subr.mxu0 %v34_v0  ;;  %v32_v3 = vld [vmem:[%s2228_s2 + $0x8] sm:$0xff]  ;;  %1709 = vmatprep.mubr.msk.f32.mxu0 %vm40_vm0, %v1950_v2 }
   0x3   :  { %1702 = vmatpush3.msra.mxu0 %v34_v0 }
   0x4   :  { %14 = vsyncpa [#allocation3], 0  ;;  %1703 = vmatprep.subr.mxu0 %v33_v1  ;;  %v31_v4 = vld [vmem:[%s2228_s2] sm:$0xff]  ;;  %v1963_v5 = vld [vmem:[%s2226_s0 + $0x8] sm:$0xff]  ;;  %s1888_s2 = smov 112   ;;  %s1889_s0 = smov 120  }
   0x5   :  { %1704 = vmatpush3.msra.mxu0 %v33_v1  ;;  %v1589_v6 = vld [vmem:[%s2232_s6] ss:$0 sm:$0xff]  ;;  %vm156_vm1 = vcmask 64512   ;;  %s1890_s19 = smov 104   ;;  %s1891_s20 = smov 96   ;;  %v151_v33 = vld [vmem:[%s2227_s1 + $0x8] sm:$0xff] }
   0x6   :  { %1705 = vmatprep.subr.mxu0 %v32_v3  ;;  %v150_v35 = vld [vmem:[%s2227_s1] sm:$0xff]  ;;  %vm509_vm2 = vcmask 130048   ;;  %s1892_s1 = smov 64   ;;  %vm1483_vm3 = vcmask 523264  }
   0x7   :  { %1706 = vmatpush3.msra.mxu0 %v32_v3 }
   0x8   :  { %1707 = vmatprep.subr.mxu0 %v31_v4 }
   0x9   :  { %1708 = vmatpush3.msra.mxu0 %v31_v4 }
   0xa   :  { %1710 = vmatmul.mubr.msk.f32.vlgmr.msra.gmra.mxu0 %vm40_vm0, %v1963_v5 }
  0xca   :  { %v1711_v7 = vpop.f32.mrf.mxu0 }
  0xcb   :  { %v1970_v8 = vadd.f32 %v1711_v7, %v1589_v6 }
  0xcc   :  { %v113_v9 = vpop.f32.mrf.mxu0 }
  0xcd   :  { %v1972_v10 = vadd.f32 %v1589_v6, %v113_v9  ;;  %132 = vrot.lane.b32.xlu1 %v1970_v8, %s1888_s2  ;;  %126 = vrot.lane.b32.xlu0 %v1970_v8, %s1889_s0  ;;  %v143_v21 = vmul.f32 0.35355338, %v1970_v8 }
  0xcf   :  { %v142_v11 = vmul.f32 0.35355338, %v1972_v10 }
  0xd1   :  { %138 = vrot.lane.b32.xlu1 %v1970_v8, %s1890_s19  ;;  %124 = vrot.lane.b32.xlu0 %v1972_v10, %s1889_s0 }
  0xd2   :  { %1716 = vmatprep.mubr.msk.f32.mxu1 %vm156_vm1, %v142_v11 }
  0xd5   :  { %136 = vrot.lane.b32.xlu1 %v1972_v10, %s1890_s19  ;;  %130 = vrot.lane.b32.xlu0 %v1972_v10, %s1888_s2 }
  0xd9   :  { %154 = vrot.lane.b32.xlu0 %v1970_v8, %s1891_s20 }
  0xdd   :  { %152 = vrot.lane.b32.xlu0 %v1972_v10, %s1891_s20 }
 0x13f   :  { %v1984_v12 = vpop.permute.xlu1 %132  ;;  %v1986_v13 = vpop.permute.xlu0 %126 }
 0x140   :  { %244 = vrot.lane.b32.xlu1 %v1986_v13, %s1891_s20  ;;  %333 = vrot.lane.b32.xlu0 %v1984_v12, %s1891_s20  ;;  %v145_v26 = vmul.f32 0.35355338, %v1986_v13  ;;  %v147_v30 = vmul.f32 0.35355338, %v1984_v12 }
 0x143   :  { %v1990_v14 = vpop.permute.xlu0 %124  ;;  %v1994_v16 = vpop.permute.xlu1 %138 }
 0x144   :  { %v144_v15 = vmul.f32 0.35355338, %v1990_v14  ;;  %242 = vrot.lane.b32.xlu1 %v1990_v14, %s1891_s20  ;;  %v149_v32 = vmul.f32 0.35355338, %v1994_v16 }
 0x146   :  { %1723 = vmatprep.mubr.msk.f32.mxu0 %vm156_vm1, %v144_v15 }
 0x147   :  { %v1997_v17 = vpop.permute.xlu0 %130  ;;  %v2001_v18 = vpop.permute.xlu1 %136 }
 0x148   :  { %422 = vrot.lane.b32.xlu1 %v1994_v16, %s1891_s20  ;;  %331 = vrot.lane.b32.xlu0 %v1997_v17, %s1891_s20  ;;  %v146_v22 = vmul.f32 0.35355338, %v1997_v17  ;;  %v148_v29 = vmul.f32 0.35355338, %v2001_v18 }
 0x14b   :  { %v155_v19 = vpop.permute.xlu0 %154 }
 0x14c   :  { %420 = vrot.lane.b32.xlu1 %v2001_v18, %s1891_s20  ;;  %1712 = vmatprep.subr.msk.mxu1 %vm156_vm1, %v155_v19 }
 0x14d   :  { %1713 = vmatpush3.xpose.msk.msra.mxu1 %vm156_vm1, %v155_v19 }
 0x14f   :  { %v153_v20 = vpop.permute.xlu0 %152 }
 0x150   :  { %1714 = vmatprep.subr.msk.mxu1 %vm156_vm1, %v153_v20 }
 0x151   :  { %1715 = vmatpush3.xpose.msk.msra.mxu1 %vm156_vm1, %v153_v20 }
 0x154   :  { %1717 = vmatmul.mubr.msk.f32.vlgmr.msra.gmra.mxu1 %vm156_vm1, %v143_v21 }
 0x155   :  { %1730 = vmatprep.mubr.msk.f32.mxu1 %vm156_vm1, %v146_v22 }
 0x1b2   :  { %v245_v23 = vpop.permute.xlu1 %244  ;;  %v334_v24 = vpop.permute.xlu0 %333 }
 0x1b3   :  { %1719 = vmatprep.subr.msk.mxu0 %vm156_vm1, %v245_v23  ;;  %1726 = vmatprep.subr.msk.mxu1 %vm156_vm1, %v334_v24 }
 0x1b4   :  { %1720 = vmatpush3.xpose.msk.msra.mxu0 %vm156_vm1, %v245_v23  ;;  %1727 = vmatpush3.xpose.msk.msra.mxu1 %vm156_vm1, %v334_v24 }
 0x1b6   :  { %v243_v25 = vpop.permute.xlu1 %242 }
 0x1b7   :  { %1721 = vmatprep.subr.msk.mxu0 %vm156_vm1, %v243_v25 }
 0x1b8   :  { %1722 = vmatpush3.xpose.msk.msra.mxu0 %vm156_vm1, %v243_v25 }
 0x1ba   :  { %v423_v27 = vpop.permute.xlu1 %422  ;;  %v332_v28 = vpop.permute.xlu0 %331 }
 0x1bb   :  { %1724 = vmatmul.mubr.msk.f32.vlgmr.msra.gmra.mxu0 %vm156_vm1, %v145_v26  ;;  %1728 = vmatprep.subr.msk.mxu1 %vm156_vm1, %v332_v28 }
 0x1bc   :  { %1733 = vmatprep.subr.msk.mxu0 %vm156_vm1, %v423_v27  ;;  %1729 = vmatpush3.xpose.msk.msra.mxu1 %vm156_vm1, %v332_v28 }
 0x1bd   :  { %1734 = vmatpush3.xpose.msk.msra.mxu0 %vm156_vm1, %v423_v27  ;;  %1737 = vmatprep.mubr.msk.f32.mxu0 %vm156_vm1, %v148_v29 }
 0x1be   :  { %v421_v31 = vpop.permute.xlu1 %420 }
 0x1bf   :  { %1731 = vmatmul.mubr.msk.f32.vlgmr.msra.gmra.mxu1 %vm156_vm1, %v147_v30  ;;  %1735 = vmatprep.subr.msk.mxu0 %vm156_vm1, %v421_v31 }
 0x1c1   :  { %1736 = vmatpush3.xpose.msk.msra.mxu0 %vm156_vm1, %v421_v31 }
 0x1c4   :  { %1738 = vmatmul.mubr.msk.f32.vlgmr.msra.gmra.mxu0 %vm156_vm1, %v149_v32 }
 0x214   :  { %v1718_v34 = vpop.f32.mrf.mxu1 }
 0x215   :  { %v239_v36 = vadd.f32 %v1718_v34, %v151_v33 }
 0x216   :  { %v233_v37 = vpop.f32.mrf.mxu1 }
 0x217   :  { %v234_v38 = vadd.f32 %v233_v37, %v150_v35  ;;  %v513_v39 = vsel %vm509_vm2, %v239_v36, -inf }
 0x218   :  { %514 = vmax.xlane.f32.xlu1 %v513_v39 }
 0x219   :  { %v510_v40 = vsel %vm509_vm2, %v234_v38, -inf }
 0x21a   :  { %511 = vmax.xlane.f32.xlu0 %v510_v40 }
 0x27b   :  { %v1725_v41 = vpop.f32.mrf.mxu0 }
 0x27c   :  { %v328_v42 = vadd.f32 %v1725_v41, %v151_v33 }
 0x27d   :  { %v322_v43 = vpop.f32.mrf.mxu0 }
 0x27e   :  { %v323_v44 = vadd.f32 %v322_v43, %v150_v35  ;;  %v519_v45 = vsel %vm509_vm2, %v328_v42, -inf }
 0x27f   :  { %v1732_v46 = vpop.f32.mrf.mxu1  ;;  %520 = vmax.xlane.f32.xlu0 %v519_v45 }
 0x280   :  { %v417_v48 = vadd.f32 %v1732_v46, %v151_v33  ;;  %v516_v50 = vsel %vm509_vm2, %v323_v44, -inf }
 0x281   :  { %v411_v47 = vpop.f32.mrf.mxu1 }
 0x282   :  { %v412_v49 = vadd.f32 %v411_v47, %v150_v35  ;;  %v525_v55 = vsel %vm509_vm2, %v417_v48, -inf }
 0x283   :  { %517 = vmax.xlane.f32.xlu0 %v516_v50 }
 0x284   :  { %v1739_v51 = vpop.f32.mrf.mxu0  ;;  %v522_v52 = vsel %vm509_vm2, %v412_v49, -inf }
 0x285   :  { %523 = vmax.xlane.f32.xlu1 %v522_v52  ;;  %v506_v53 = vadd.f32 %v1739_v51, %v151_v33 }
 0x286   :  { %v500_v54 = vpop.f32.mrf.mxu0 }
 0x287   :  { %v501_v56 = vadd.f32 %v500_v54, %v150_v35  ;;  %526 = vmax.xlane.f32.xlu0 %v525_v55  ;;  %v531_v58 = vsel %vm509_vm2, %v506_v53, -inf }
 0x289   :  { %v528_v57 = vsel %vm509_vm2, %v501_v56, -inf }
 0x28a   :  { %529 = vmax.xlane.f32.xlu1 %v528_v57 }
 0x28b   :  { %532 = vmax.xlane.f32.xlu0 %v531_v58 }
 0x29b   :  { %608 = vrot.lane.b32.xlu1 %v1970_v8, %s1892_s1 }
 0x29f   :  { %695 = vrot.lane.b32.xlu1 %v1986_v13, %s1892_s1 }
 0x2a1   :  { %606 = vrot.lane.b32.xlu0 %v1972_v10, %s1892_s1  ;;  %v515_v59 = vpop.xlane.xlu1 %514 }
 0x2a2   :  { %v535_v60 = vsub.f32 %v239_v36, %v515_v59 }
 0x2a3   :  { %693 = vrot.lane.b32.xlu1 %v1990_v14, %s1892_s1  ;;  %v512_v62 = vpop.xlane.xlu0 %511 }
 0x2a4   :  { %v544_v61 = vmul.f32 1.442695, %v535_v60  ;;  %v534_v63 = vsub.f32 %v234_v38, %v512_v62 }
 0x2a5   :  { %782 = vrot.lane.b32.xlu0 %v1984_v12, %s1892_s1 }
 0x2a6   :  { %1826 = vpow2.f32 %v544_v61  ;;  %v542_v0 = vmul.f32 1.442695, %v534_v63 }
 0x2a7   :  { %780 = vrot.lane.b32.xlu1 %v1997_v17, %s1892_s1 }
 0x2a8   :  { %1828 = vpow2.f32 %v542_v0 }
 0x2b3   :  { %v2058_v1 = vpop.eup %1826 }
 0x2b4   :  { %v561_v3 = vsel %vm509_vm2, %v2058_v1, 0.0 }
 0x2b5   :  { %v2062_v4 = vpop.eup %1828 }
 0x2b6   :  { %v558_v6 = vsel %vm509_vm2, %v2062_v4, 0.0 }
 0x2c4   :  { %562 = vadd.xlane.f32.xlu0 %v561_v3 }
 0x2cb   :  { %559 = vadd.xlane.f32.xlu1 %v558_v6 }
 0x308   :  { %v521_v7 = vpop.xlane.xlu0 %520 }
 0x309   :  { %v537_v8 = vsub.f32 %v328_v42, %v521_v7 }
 0x30b   :  { %v548_v9 = vmul.f32 1.442695, %v537_v8  ;;  %v955_v8 = vld [vmem:[%s2229_s3 + $0x8] sm:$0xff] }
 0x30c   :  { %v518_v10 = vpop.xlane.xlu0 %517 }
 0x30d   :  { %1830 = vpow2.f32 %v548_v9  ;;  %v536_v11 = vsub.f32 %v323_v44, %v518_v10  ;;  %v956_v9 = vld [vmem:[%s2229_s3 + $0x10] sm:$0xff]  ;;  %v957_v10 = vld [vmem:[%s2229_s3 + $0x18] sm:$0xff] }
 0x30e   :  { %v524_v12 = vpop.xlane.xlu1 %523 }
 0x30f   :  { %v546_v13 = vmul.f32 1.442695, %v536_v11  ;;  %v538_v14 = vsub.f32 %v412_v49, %v524_v12 }
 0x310   :  { %v527_v15 = vpop.xlane.xlu0 %526 }
 0x311   :  { %1832 = vpow2.f32 %v546_v13  ;;  %v550_v17 = vmul.f32 1.442695, %v538_v14  ;;  %v539_v19 = vsub.f32 %v417_v48, %v527_v15 }
 0x313   :  { %1834 = vpow2.f32 %v550_v17  ;;  %v552_v20 = vmul.f32 1.442695, %v539_v19  ;;  %v530_v21 = vpop.xlane.xlu1 %529 }
 0x314   :  { %v540_v22 = vsub.f32 %v501_v56, %v530_v21  ;;  %v533_v23 = vpop.xlane.xlu0 %532 }
 0x315   :  { %1836 = vpow2.f32 %v552_v20  ;;  %v541_v24 = vsub.f32 %v506_v53, %v533_v23 }
 0x316   :  { %v554_v25 = vmul.f32 1.442695, %v540_v22 }
 0x317   :  { %v556_v26 = vmul.f32 1.442695, %v541_v24  ;;  %v609_v27 = vpop.permute.xlu1 %608 }
 0x318   :  { %1838 = vpow2.f32 %v554_v25  ;;  %1740 = vmatprep.subr.mxu0 %v609_v27  ;;  %v607_v28 = vpop.permute.xlu0 %606 }
 0x319   :  { %1840 = vpow2.f32 %v556_v26  ;;  %1741 = vmatpush3.msra.mxu0 %v609_v27 }
 0x31a   :  { %v1831_v29 = vpop.eup %1830  ;;  %1742 = vmatprep.subr.mxu0 %v607_v28 }
 0x31b   :  { %v696_v30 = vpop.permute.xlu1 %695  ;;  %1743 = vmatpush3.msra.mxu0 %v607_v28  ;;  %v567_v31 = vsel %vm509_vm2, %v1831_v29, 0.0 }
 0x31c   :  { %1747 = vmatprep.subr.mxu1 %v696_v30  ;;  %568 = vadd.xlane.f32.xlu0 %v567_v31  ;;  %v783_v32 = vpop.permute.xlu0 %782  ;;  %v1624_v31 = vld [vmem:[%s2232_s6 + $0x2] ss:$0 sm:$0xff] }
 0x31d   :  { %1748 = vmatpush3.msra.mxu1 %v696_v30  ;;  %1754 = vmatprep.subr.mxu0 %v783_v32 }
 0x31e   :  { %v1833_v33 = vpop.eup %1832 }
 0x31f   :  { %v694_v34 = vpop.permute.xlu1 %693  ;;  %v564_v35 = vsel %vm509_vm2, %v1833_v33, 0.0 }
 0x320   :  { %v1835_v36 = vpop.eup %1834  ;;  %1749 = vmatprep.subr.mxu1 %v694_v34  ;;  %565 = vadd.xlane.f32.xlu1 %v564_v35 }
 0x321   :  { %1750 = vmatpush3.msra.mxu1 %v694_v34  ;;  %v570_v38 = vsel %vm509_vm2, %v1835_v36, 0.0 }
 0x322   :  { %v1837_v37 = vpop.eup %1836 }
 0x323   :  { %v573_v39 = vsel %vm509_vm2, %v1837_v37, 0.0  ;;  %v781_v45 = vpop.permute.xlu1 %780 }
 0x324   :  { %571 = vadd.xlane.f32.xlu1 %v570_v38  ;;  %574 = vadd.xlane.f32.xlu0 %v573_v39 }
 0x325   :  { %v1839_v40 = vpop.eup %1838 }
 0x326   :  { %v2070_v41 = vpop.eup %1840  ;;  %v576_v42 = vsel %vm509_vm2, %v1839_v40, 0.0 }
 0x327   :  { %v579_v43 = vsel %vm509_vm2, %v2070_v41, 0.0 }
 0x328   :  { %577 = vadd.xlane.f32.xlu1 %v576_v42  ;;  %580 = vadd.xlane.f32.xlu0 %v579_v43 }
 0x339   :  { %867 = vrot.lane.b32.xlu1 %v2001_v18, %s1892_s1  ;;  %v954_v18 = vld [vmem:[%s2229_s3] sm:$0xff] }
 0x33e   :  { %869 = vrot.lane.b32.xlu0 %v1994_v16, %s1892_s1 }
 0x34d   :  { %v563_v44 = vpop.xlane.xlu0 %562 }
 0x34e   :  { %1842 = vrcp.f32 %v563_v44 }
 0x354   :  { %v560_v46 = vpop.xlane.xlu1 %559 }
 0x355   :  { %1844 = vrcp.f32 %v560_v46 }
 0x35b   :  { %v1843_v47 = vpop.eup %1842 }
 0x35c   :  { %v591_v48 = vmul.f32 %v1843_v47, %v2058_v1 }
 0x35e   :  { %599 = vst.msk [vmem:[%s2234_s8 + $0x8] sm:$0xff] %vm509_vm2, %v591_v48 }
 0x362   :  { %v1845_v49 = vpop.eup %1844 }
 0x363   :  { %v590_v50 = vmul.f32 %v1845_v49, %v2062_v4 }
 0x365   :  { %598 = vst.msk [vmem:[%s2234_s8] sm:$0xff] %vm509_vm2, %v590_v50  ;;  %1744 = vmatprep.mubr.msk.f32.mxu0 %vm509_vm2, %v590_v50 }
 0x366   :  { %1745 = vmatmul.mubr.msk.f32.vlgmr.msra.gmra.mxu0 %vm509_vm2, %v591_v48 }
 0x367   :  { %1755 = vmatpush3.msra.mxu0 %v783_v32 }
 0x368   :  { %1756 = vmatprep.subr.mxu0 %v781_v45 }
 0x369   :  { %1757 = vmatpush3.msra.mxu0 %v781_v45 }
 0x36a   :  { %1768 = vmatprep.subr.mxu0 %v954_v18 }
 0x3a5   :  { %v569_v16 = vpop.xlane.xlu0 %568 }
 0x3a6   :  { %1846 = vrcp.f32 %v569_v16 }
 0x3a9   :  { %v566_v51 = vpop.xlane.xlu1 %565 }
 0x3aa   :  { %1848 = vrcp.f32 %v566_v51 }
 0x3ad   :  { %v572_v52 = vpop.xlane.xlu1 %571  ;;  %v575_v53 = vpop.xlane.xlu0 %574 }
 0x3ae   :  { %1850 = vrcp.f32 %v572_v52 }
 0x3af   :  { %1852 = vrcp.f32 %v575_v53 }
 0x3b1   :  { %v578_v54 = vpop.xlane.xlu1 %577  ;;  %v581_v55 = vpop.xlane.xlu0 %580 }
 0x3b2   :  { %1854 = vrcp.f32 %v578_v54 }
 0x3b3   :  { %v1847_v56 = vpop.eup %1846  ;;  %1856 = vrcp.f32 %v581_v55  ;;  %v1625_v55 = vld [vmem:[%s2232_s6 + $0x3] ss:$0 sm:$0xff] }
 0x3b4   :  { %v593_v57 = vmul.f32 %v1847_v56, %v1831_v29 }
 0x3b5   :  { %v870_v58 = vpop.permute.xlu0 %869  ;;  %v868_v63 = vpop.permute.xlu1 %867 }
 0x3b6   :  { %1761 = vmatprep.subr.mxu1 %v870_v58  ;;  %601 = vst.msk [vmem:[%s2234_s8 + $0x18] sm:$0xff] %vm509_vm2, %v593_v57 }
 0x3b7   :  { %v1849_v59 = vpop.eup %1848 }
 0x3b8   :  { %v592_v60 = vmul.f32 %v1849_v59, %v1833_v33 }
 0x3ba   :  { %600 = vst.msk [vmem:[%s2234_s8 + $0x10] sm:$0xff] %vm509_vm2, %v592_v60  ;;  %1751 = vmatprep.mubr.msk.f32.mxu1 %vm509_vm2, %v592_v60 }
 0x3bb   :  { %v1851_v61 = vpop.eup %1850  ;;  %1752 = vmatmul.mubr.msk.f32.vlgmr.msra.gmra.mxu1 %vm509_vm2, %v593_v57  ;;  %v1626_v57 = vld [vmem:[%s2232_s6 + $0x4] ss:$0 sm:$0xff] }
 0x3bc   :  { %v1853_v62 = vpop.eup %1852  ;;  %1762 = vmatpush3.msra.mxu1 %v870_v58  ;;  %v594_v0 = vmul.f32 %v1851_v61, %v1835_v36 }
 0x3bd   :  { %1763 = vmatprep.subr.mxu1 %v868_v63  ;;  %v595_v1 = vmul.f32 %v1853_v62, %v1837_v37 }
 0x3be   :  { %1764 = vmatpush3.msra.mxu1 %v868_v63  ;;  %602 = vst.msk [vmem:[%s2234_s8 + $0x20] sm:$0xff] %vm509_vm2, %v594_v0  ;;  %1758 = vmatprep.mubr.msk.f32.mxu0 %vm509_vm2, %v594_v0 }
 0x3bf   :  { %v1855_v3 = vpop.eup %1854  ;;  %603 = vst.msk [vmem:[%s2234_s8 + $0x28] sm:$0xff] %vm509_vm2, %v595_v1  ;;  %1759 = vmatmul.mubr.msk.f32.vlgmr.msra.gmra.mxu0 %vm509_vm2, %v595_v1  ;;  %1773 = vmatprep.subr.mxu1 %v955_v8 }
 0x3c0   :  { %v1857_v4 = vpop.eup %1856  ;;  %v596_v6 = vmul.f32 %v1855_v3, %v1839_v40  ;;  %1769 = vmatpush3.msra.mxu0 %v954_v18 }
 0x3c1   :  { %v597_v7 = vmul.f32 %v1857_v4, %v2070_v41  ;;  %1778 = vmatprep.subr.mxu0 %v956_v9 }
 0x3c2   :  { %604 = vst.msk [vmem:[%s2234_s8 + $0x30] sm:$0xff] %vm509_vm2, %v596_v6  ;;  %1765 = vmatprep.mubr.msk.f32.mxu1 %vm509_vm2, %v596_v6 }
 0x3c3   :  { %605 = vst.msk [vmem:[%s2234_s8 + $0x38] sm:$0xff] %vm509_vm2, %v597_v7  ;;  %1766 = vmatmul.mubr.msk.f32.vlgmr.msra.gmra.mxu1 %vm509_vm2, %v597_v7 }
 0x3c4   :  { %1774 = vmatpush3.msra.mxu1 %v955_v8 }
 0x3c5   :  { %1783 = vmatprep.subr.mxu1 %v957_v10 }
 0x426   :  { %v1746_v11 = vpop.f32.mrf.mxu0 }
 0x428   :  { %v684_v12 = vpop.f32.mrf.mxu0 }
 0x429   :  { %1770 = vmatprep.mubr.msk.f32.mxu0 %vm156_vm1, %v684_v12 }
 0x42a   :  { %1771 = vmatmul.mubr.msk.f32.vlgmr.msra.gmra.mxu0 %vm156_vm1, %v1746_v11 }
 0x42b   :  { %1779 = vmatpush3.msra.mxu0 %v956_v9 }
 0x47b   :  { %v1753_v13 = vpop.f32.mrf.mxu1 }
 0x47d   :  { %v771_v14 = vpop.f32.mrf.mxu1 }
 0x47e   :  { %1775 = vmatprep.mubr.msk.f32.mxu1 %vm156_vm1, %v771_v14  ;;  %v1381_v14 = vld [vmem:[%s2230_s4 + $0x18] sm:$0xff] }
 0x47f   :  { %v1760_v15 = vpop.f32.mrf.mxu0  ;;  %1776 = vmatmul.mubr.msk.f32.vlgmr.msra.gmra.mxu1 %vm156_vm1, %v1753_v13  ;;  %1788 = vmatprep.subr.mxu0 %v1381_v14 }
 0x480   :  { %1784 = vmatpush3.msra.mxu1 %v957_v10 }
 0x481   :  { %v858_v17 = vpop.f32.mrf.mxu0 }
 0x482   :  { %1780 = vmatprep.mubr.msk.f32.mxu0 %vm156_vm1, %v858_v17  ;;  %v1379_v17 = vld [vmem:[%s2230_s4 + $0x8] sm:$0xff] }
 0x483   :  { %v1767_v19 = vpop.f32.mrf.mxu1  ;;  %1781 = vmatmul.mubr.msk.f32.vlgmr.msra.gmra.mxu0 %vm156_vm1, %v1760_v15  ;;  %v1380_v15 = vld [vmem:[%s2230_s4 + $0x10] sm:$0xff] }
 0x484   :  { %1789 = vmatpush3.msra.mxu0 %v1381_v14 }
 0x485   :  { %v945_v20 = vpop.f32.mrf.mxu1  ;;  %1790 = vmatprep.subr.mxu0 %v1380_v15 }
 0x486   :  { %1785 = vmatprep.mubr.msk.f32.mxu1 %vm156_vm1, %v945_v20  ;;  %1791 = vmatpush3.msra.mxu0 %v1380_v15  ;;  %v1477_v20 = vld [vmem:[%s2231_s5 + $0x38] sm:$0xff] }
 0x487   :  { %1786 = vmatmul.mubr.msk.f32.vlgmr.msra.gmra.mxu1 %vm156_vm1, %v1767_v19  ;;  %1792 = vmatprep.subr.mxu0 %v1379_v17  ;;  %v1378_v19 = vld [vmem:[%s2230_s4] sm:$0xff] }
 0x488   :  { %1793 = vmatpush3.msra.mxu0 %v1379_v17  ;;  %1799 = vmatprep.subr.mxu1 %v1477_v20 }
 0x489   :  { %1794 = vmatprep.subr.mxu0 %v1378_v19  ;;  %1800 = vmatpush3.msra.mxu1 %v1477_v20 }
 0x48a   :  { %1795 = vmatpush3.msra.mxu0 %v1378_v19 }
 0x4ea   :  { %v1772_v21 = vpop.f32.mrf.mxu0 }
 0x4ec   :  { %v1030_v23 = vpop.f32.mrf.mxu0 }
 0x53f   :  { %v1777_v22 = vpop.f32.mrf.mxu1 }
 0x540   :  { %v1283_v26 = vadd.f32 %v1777_v22, %v1772_v21  ;;  %v1476_v21 = vld [vmem:[%s2231_s5 + $0x30] sm:$0xff]  ;;  %v1475_v22 = vld [vmem:[%s2231_s5 + $0x28] sm:$0xff] }
 0x541   :  { %v1111_v24 = vpop.f32.mrf.mxu1  ;;  %1801 = vmatprep.subr.mxu1 %v1476_v21 }
 0x542   :  { %v1282_v28 = vadd.f32 %v1111_v24, %v1030_v23  ;;  %1802 = vmatpush3.msra.mxu1 %v1476_v21  ;;  %v1474_v23 = vld [vmem:[%s2231_s5 + $0x20] sm:$0xff] }
 0x543   :  { %v1782_v25 = vpop.f32.mrf.mxu0  ;;  %1803 = vmatprep.subr.mxu1 %v1475_v22 }
 0x544   :  { %v1285_v29 = vadd.f32 %v1782_v25, %v1283_v26  ;;  %1804 = vmatpush3.msra.mxu1 %v1475_v22 }
 0x545   :  { %v1192_v27 = vpop.f32.mrf.mxu0  ;;  %1805 = vmatprep.subr.mxu1 %v1474_v23 }
 0x546   :  { %v1284_v32 = vadd.f32 %v1282_v28, %v1192_v27  ;;  %1806 = vmatpush3.msra.mxu1 %v1474_v23 }
 0x547   :  { %v1787_v30 = vpop.f32.mrf.mxu1 }
 0x548   :  { %v1287_v33 = vadd.f32 %v1787_v30, %v1285_v29 }
 0x549   :  { %v1273_v34 = vpop.f32.mrf.mxu1 }
 0x54a   :  { %v1294_v35 = vadd.f32 %v1624_v31, %v1287_v33  ;;  %v1286_v36 = vadd.f32 %v1284_v32, %v1273_v34  ;;  %v1628_v33 = vld [vmem:[%s2232_s6 + $0x6] ss:$0 sm:$0xff] }
 0x54c   :  { %v1293_v37 = vadd.f32 %v1624_v31, %v1286_v36  ;;  %v1296_v38 = vadd.f32 %v1294_v35, %v1963_v5  ;;  %v1627_v31 = vld [vmem:[%s2232_s6 + $0x5] ss:$0 sm:$0xff] }
 0x54e   :  { %v1300_v39 = vsel %vm40_vm0, %v1296_v38, 0.0  ;;  %v1295_v40 = vadd.f32 %v1293_v37, %v1950_v2 }
 0x54f   :  { %1301 = vadd.xlane.f32.xlu1 %v1300_v39 }
 0x550   :  { %v1297_v41 = vsel %vm40_vm0, %v1295_v40, 0.0 }
 0x551   :  { %1298 = vadd.xlane.f32.xlu0 %v1297_v41  ;;  %v1472_v41 = vld [vmem:[%s2231_s5 + $0x10] sm:$0xff] }
 0x5d8   :  { %v1302_v42 = vpop.xlane.xlu1 %1301 }
 0x5d9   :  { %v1305_v43 = vmul.f32 0.03125, %v1302_v42  ;;  %v1471_v42 = vld [vmem:[%s2231_s5 + $0x8] sm:$0xff] }
 0x5da   :  { %v1299_v44 = vpop.xlane.xlu0 %1298 }
 0x5db   :  { %v1304_v45 = vmul.f32 0.03125, %v1299_v44  ;;  %v1307_v46 = vsub.f32 %v1296_v38, %v1305_v43  ;;  %v1470_v43 = vld [vmem:[%s2231_s5] sm:$0xff] }
 0x5dc   :  { %v1629_v44 = vld [vmem:[%s2232_s6 + $0x1] ss:$0 sm:$0xff] }
 0x5dd   :  { %v1306_v47 = vsub.f32 %v1295_v40, %v1304_v45  ;;  %v1309_v50 = vmul.f32 %v1307_v46, %v1307_v46  ;;  %v1473_v40 = vld [vmem:[%s2231_s5 + $0x18] sm:$0xff]  ;;  %s1893_s5 = smov [#allocation2]  }
 0x5de   :  { %1807 = vmatprep.subr.mxu1 %v1473_v40  ;;  %s1574_s10 = sshll.u32 %s1893_s5, 4  ;;  %s1575_s10 = int_to_ptr.vmem [resolvable:$true] %s1574_s10 }
 0x5df   :  { %v1308_v48 = vmul.f32 %v1306_v47, %v1306_v47  ;;  %v1313_v5 = vsel %vm40_vm0, %v1309_v50, 0.0  ;;  %1808 = vmatpush3.msra.mxu1 %v1473_v40  ;;  %s1866_s11 = scalar_lea.vmem %s1575_s10, 256  ;;  %p1871_p1 = scmp.lt.s32.totalorder %s1575_s10, %s1575_s10 }
 0x5e0   :  { %1809 = vmatprep.subr.mxu1 %v1472_v41  ;;  %p1867_p0 = scmp.ne.s32.totalorder %s1575_s10, %s1866_s11  ;;  %p1872_p2 = scmp.lt.s32.totalorder %s1866_s11, %s1866_s11 }
 0x5e1   :  { %v1310_v49 = vsel %vm40_vm0, %v1308_v48, 0.0  ;;  %1810 = vmatpush3.msra.mxu1 %v1472_v41 }
 0x5e2   :  { %1311 = vadd.xlane.f32.xlu0 %v1310_v49  ;;  %1811 = vmatprep.subr.mxu1 %v1471_v42  ;;  %p1873_p3 = por %p1872_p2, %p1871_p1 }
 0x5e3   :  { %1812 = vmatpush3.msra.mxu1 %v1471_v42 }
 0x5e4   :  { %1813 = vmatprep.subr.mxu1 %v1470_v43  ;;  %p1874_p4 = pnand %p1873_p3, %p1867_p0 }
 0x5e5   :  { %1814 = vmatpush3.msra.mxu1 %v1470_v43 }
 0x5e6   :  { %1314 = vadd.xlane.f32.xlu0 %v1313_v5  ;;  %v1632_v5 = vld [vmem:[%s2232_s6 + $0x7] ss:$0 sm:$0xff] }
 0x66b   :  { %v1312_v16 = vpop.xlane.xlu0 %1311 }
 0x66c   :  { %v1316_v2 = vmul.f32 0.03125, %v1312_v16 }
 0x66e   :  { %v1318_v18 = vadd.f32 1e-06, %v1316_v2 }
 0x66f   :  { %v1315_v51 = vpop.xlane.xlu0 %1314 }
 0x670   :  { %1858 = vrsqrt.f32 %v1318_v18  ;;  %v1317_v52 = vmul.f32 0.03125, %v1315_v51 }
 0x672   :  { %v1319_v53 = vadd.f32 1e-06, %v1317_v52 }
 0x674   :  { %1860 = vrsqrt.f32 %v1319_v53 }
 0x67d   :  { %v1859_v54 = vpop.eup %1858 }
 0x67e   :  { %v1322_v56 = vmul.f32 %v1859_v54, %v1306_v47 }
 0x680   :  { %v1329_v58 = vmul.f32 %v1625_v55, %v1322_v56 }
 0x681   :  { %v1861_v59 = vpop.eup %1860 }
 0x682   :  { %v2157_v60 = vadd.f32 %v1626_v57, %v1329_v58  ;;  %v1323_v61 = vmul.f32 %v1861_v59, %v1307_v46 }
 0x684   :  { %v1338_v62 = vsel %vm40_vm0, %v2157_v60, 0.0  ;;  %v1330_v63 = vmul.f32 %v1625_v55, %v1323_v61 }
 0x685   :  { %1339 = vadd.xlane.f32.xlu1 %v1338_v62 }
 0x686   :  { %v2161_v0 = vadd.f32 %v1626_v57, %v1330_v63 }
 0x688   :  { %v1341_v1 = vsel %vm40_vm0, %v2161_v0, 0.0 }
 0x689   :  { %1342 = vadd.xlane.f32.xlu0 %v1341_v1 }
 0x70e   :  { %v1340_v3 = vpop.xlane.xlu1 %1339 }
 0x70f   :  { %v1344_v4 = vmul.f32 0.03125, %v1340_v3 }
 0x711   :  { %v1346_v6 = vsub.f32 %v2157_v60, %v1344_v4 }
 0x712   :  { %v1343_v7 = vpop.xlane.xlu0 %1342 }
 0x713   :  { %v1345_v8 = vmul.f32 0.03125, %v1343_v7  ;;  %v1348_v9 = vmul.f32 %v1346_v6, %v1346_v6 }
 0x715   :  { %v1347_v10 = vsub.f32 %v2161_v0, %v1345_v8  ;;  %v1350_v11 = vsel %vm40_vm0, %v1348_v9, 0.0 }
 0x716   :  { %1351 = vadd.xlane.f32.xlu1 %v1350_v11 }
 0x717   :  { %v1349_v12 = vmul.f32 %v1347_v10, %v1347_v10 }
 0x719   :  { %v1353_v13 = vsel %vm40_vm0, %v1349_v12, 0.0 }
 0x71a   :  { %1354 = vadd.xlane.f32.xlu0 %v1353_v13 }
 0x79f   :  { %v1352_v24 = vpop.xlane.xlu1 %1351 }
 0x7a0   :  { %v1356_v25 = vmul.f32 0.03125, %v1352_v24 }
 0x7a2   :  { %v1358_v26 = vadd.f32 1e-06, %v1356_v25 }
 0x7a3   :  { %v1355_v27 = vpop.xlane.xlu0 %1354 }
 0x7a4   :  { %1862 = vrsqrt.f32 %v1358_v26  ;;  %v1357_v28 = vmul.f32 0.03125, %v1355_v27 }
 0x7a6   :  { %v1359_v29 = vadd.f32 1e-06, %v1357_v28 }
 0x7a8   :  { %1864 = vrsqrt.f32 %v1359_v29 }
 0x7b1   :  { %v1863_v30 = vpop.eup %1862 }
 0x7b2   :  { %v1362_v32 = vmul.f32 %v1863_v30, %v1346_v6 }
 0x7b4   :  { %v1369_v34 = vmul.f32 %v1627_v31, %v1362_v32 }
 0x7b5   :  { %v1865_v35 = vpop.eup %1864 }
 0x7b6   :  { %v1363_v36 = vmul.f32 %v1865_v35, %v1347_v10  ;;  %v1376_v37 = vadd.f32 %v1628_v33, %v1369_v34 }
 0x7b8   :  { %v1370_v38 = vmul.f32 %v1627_v31, %v1363_v36  ;;  %1796 = vmatprep.mubr.msk.f32.mxu0 %vm40_vm0, %v1376_v37 }
 0x7ba   :  { %v1377_v39 = vadd.f32 %v1628_v33, %v1370_v38 }
 0x7bc   :  { %1797 = vmatmul.mubr.msk.f32.vlgmr.msra.gmra.mxu0 %vm40_vm0, %v1377_v39 }
 0x87c   :  { %v1798_v45 = vpop.f32.mrf.mxu0 }
 0x87d   :  { %v1465_v46 = vadd.f32 %v1798_v45, %v1629_v44 }
 0x87e   :  { %v1459_v47 = vpop.f32.mrf.mxu0 }
 0x87f   :  { %v1460_v48 = vadd.f32 %v1629_v44, %v1459_v47  ;;  %v1469_v50 = vmax.f32 %v1465_v46, 0.0 }
 0x881   :  { %v1468_v49 = vmax.f32 %v1460_v48, 0.0 }
 0x883   :  { %1815 = vmatprep.mubr.msk.f32.mxu1 %vm1483_vm3, %v1468_v49 }
 0x884   :  { %1816 = vmatmul.mubr.msk.f32.vlgmr.msra.gmra.mxu1 %vm1483_vm3, %v1469_v50 }
 0x944   :  { %v1817_v16 = vpop.f32.mrf.mxu1 }
 0x945   :  { %v1562_v2 = vadd.f32 %v1817_v16, %v1632_v5 }
 0x946   :  { %v1556_v18 = vpop.f32.mrf.mxu1 }
 0x947   :  { %v1566_v51 = vadd.f32 %v1562_v2, %v2161_v0  ;;  %v1557_v52 = vadd.f32 %v1632_v5, %v1556_v18 }
 0x949   :  { %1568 = vst.msk [vmem:[#allocation2 + $0x8] sm:$0xff] %vm40_vm0, %v1566_v51  ;;  %v1565_v53 = vadd.f32 %v1557_v52, %v2157_v60 }
 0x94b   :  { %1567 = vst.msk [vmem:[#allocation2] sm:$0xff] %vm40_vm0, %v1565_v53 }
 0x94c   :  { %1877 = shalt.err (!%p1874_p4)
}
 0x94d   :  { %s1894_s6 = smov 128   ;;  %s1895_s12 = smov 8  }
 0x94e   :  { %1580 = dma.vmem_to_hbm [thread:$0]  %s1575_s10, 256, %s2233_s7, [#allocation3], %s1894_s6, %s1894_s6, %s1895_s12  }
 0x94f   :  { %1886 = dma.done.wait [#allocation3], 256  }
 0x950   :  { %1887 = vsyncadd [#allocation3], 4294967040 }
 0x951   :  { %1588 = vsyncpa [#allocation3], 1 }

// kernel: transformer_encoder.2
= control target key start
LH: loop header
LB: loop body
LE: loop exit
PB: predicated region body
PF: predicated region fallthrough
CT: control target
= control target key end

     0   :  { %vm39_vm0 = vcmask 261120   ;;  %vm155_vm1 = vcmask 64512   ;;  %s1852_s19 = smov 104   ;;  %s1853_s20 = smov 96   ;;  %vm508_vm2 = vcmask 130048   ;;  %vm1482_vm3 = vcmask 523264   ;;  %s2200_s2 = inlined_call_operand.vmem [shape: f32[32,96], index: 2, kind: input, shape index: {}]   ;;  %s2201_s0 = inlined_call_operand.vmem [shape: f32[16,32], index: 0, kind: input, shape index: {}]   ;;  %s2202_s6 = inlined_call_operand.vmem [shape: f32[8,96], index: 6, kind: input, shape index: {}]   ;;  %s2203_s1 = inlined_call_operand.vmem [shape: f32[16,16], index: 1, kind: input, shape index: {}]   ;;  %s2204_s8 = inlined_call_operand.vmem [shape: f32[4,16,16], index: 8, kind: output, shape index: {1}]   ;;  %s2205_s3 = inlined_call_operand.vmem [shape: f32[4,8,32], index: 3, kind: input, shape index: {}]   ;;  %s2206_s4 = inlined_call_operand.vmem [shape: f32[32,64], index: 4, kind: input, shape index: {}]   ;;  %s2207_s5 = inlined_call_operand.vmem [shape: f32[64,32], index: 5, kind: input, shape index: {}]   ;;  %s2208_s7 = inlined_call_operand.vmem [shape: f32[16,32], index: 7, kind: output, shape index: {0}]  }
   0x1   :  { %v33_v0 = vld [vmem:[%s2200_s2 + $0x18] sm:$0xff]  ;;  %v32_v1 = vld [vmem:[%s2200_s2 + $0x10] sm:$0xff]  ;;  %v1909_v2 = vld [vmem:[%s2201_s0] sm:$0xff] }
   0x2   :  { %1688 = vmatprep.subr.mxu0 %v33_v0  ;;  %v31_v3 = vld [vmem:[%s2200_s2 + $0x8] sm:$0xff]  ;;  %1696 = vmatprep.mubr.msk.f32.mxu0 %vm39_vm0, %v1909_v2  ;;  %v30_v4 = vld [vmem:[%s2200_s2] sm:$0xff]  ;;  %s1850_s2 = smov 112  }
   0x3   :  { %1689 = vmatpush3.msra.mxu0 %v33_v0  ;;  %v1922_v5 = vld [vmem:[%s2201_s0 + $0x8] sm:$0xff]  ;;  %v1576_v6 = vld [vmem:[%s2202_s6] ss:$0 sm:$0xff]  ;;  %s1851_s0 = smov 120  }
   0x4   :  { %1690 = vmatprep.subr.mxu0 %v32_v1  ;;  %v150_v33 = vld [vmem:[%s2203_s1 + $0x8] sm:$0xff]  ;;  %v149_v35 = vld [vmem:[%s2203_s1] sm:$0xff]  ;;  %s1854_s1 = smov 64  }
   0x5   :  { %1691 = vmatpush3.msra.mxu0 %v32_v1 }
   0x6   :  { %1692 = vmatprep.subr.mxu0 %v31_v3 }
   0x7   :  { %1693 = vmatpush3.msra.mxu0 %v31_v3 }
   0x8   :  { %1694 = vmatprep.subr.mxu0 %v30_v4 }
   0x9   :  { %1695 = vmatpush3.msra.mxu0 %v30_v4 }
   0xa   :  { %1697 = vmatmul.mubr.msk.f32.vlgmr.msra.gmra.mxu0 %vm39_vm0, %v1922_v5 }
  0xca   :  { %v1698_v7 = vpop.f32.mrf.mxu0 }
  0xcb   :  { %v1929_v8 = vadd.f32 %v1698_v7, %v1576_v6 }
  0xcc   :  { %v112_v9 = vpop.f32.mrf.mxu0 }
  0xcd   :  { %v1931_v10 = vadd.f32 %v1576_v6, %v112_v9  ;;  %131 = vrot.lane.b32.xlu1 %v1929_v8, %s1850_s2  ;;  %125 = vrot.lane.b32.xlu0 %v1929_v8, %s1851_s0  ;;  %v142_v21 = vmul.f32 0.35355338, %v1929_v8 }
  0xcf   :  { %v141_v11 = vmul.f32 0.35355338, %v1931_v10 }
  0xd1   :  { %137 = vrot.lane.b32.xlu1 %v1929_v8, %s1852_s19  ;;  %123 = vrot.lane.b32.xlu0 %v1931_v10, %s1851_s0 }
  0xd2   :  { %1703 = vmatprep.mubr.msk.f32.mxu1 %vm155_vm1, %v141_v11 }
  0xd5   :  { %135 = vrot.lane.b32.xlu1 %v1931_v10, %s1852_s19  ;;  %129 = vrot.lane.b32.xlu0 %v1931_v10, %s1850_s2 }
  0xd9   :  { %153 = vrot.lane.b32.xlu0 %v1929_v8, %s1853_s20 }
  0xdd   :  { %151 = vrot.lane.b32.xlu0 %v1931_v10, %s1853_s20 }
 0x13f   :  { %v1943_v12 = vpop.permute.xlu1 %131  ;;  %v1945_v13 = vpop.permute.xlu0 %125 }
 0x140   :  { %243 = vrot.lane.b32.xlu1 %v1945_v13, %s1853_s20  ;;  %332 = vrot.lane.b32.xlu0 %v1943_v12, %s1853_s20  ;;  %v144_v26 = vmul.f32 0.35355338, %v1945_v13  ;;  %v146_v30 = vmul.f32 0.35355338, %v1943_v12 }
 0x143   :  { %v1949_v14 = vpop.permute.xlu0 %123  ;;  %v1953_v16 = vpop.permute.xlu1 %137 }
 0x144   :  { %v143_v15 = vmul.f32 0.35355338, %v1949_v14  ;;  %241 = vrot.lane.b32.xlu1 %v1949_v14, %s1853_s20  ;;  %v148_v32 = vmul.f32 0.35355338, %v1953_v16 }
 0x146   :  { %1710 = vmatprep.mubr.msk.f32.mxu0 %vm155_vm1, %v143_v15 }
 0x147   :  { %v1956_v17 = vpop.permute.xlu0 %129  ;;  %v1960_v18 = vpop.permute.xlu1 %135 }
 0x148   :  { %421 = vrot.lane.b32.xlu1 %v1953_v16, %s1853_s20  ;;  %330 = vrot.lane.b32.xlu0 %v1956_v17, %s1853_s20  ;;  %v145_v22 = vmul.f32 0.35355338, %v1956_v17  ;;  %v147_v29 = vmul.f32 0.35355338, %v1960_v18 }
 0x14b   :  { %v154_v19 = vpop.permute.xlu0 %153 }
 0x14c   :  { %419 = vrot.lane.b32.xlu1 %v1960_v18, %s1853_s20  ;;  %1699 = vmatprep.subr.msk.mxu1 %vm155_vm1, %v154_v19 }
 0x14d   :  { %1700 = vmatpush3.xpose.msk.msra.mxu1 %vm155_vm1, %v154_v19 }
 0x14f   :  { %v152_v20 = vpop.permute.xlu0 %151 }
 0x150   :  { %1701 = vmatprep.subr.msk.mxu1 %vm155_vm1, %v152_v20 }
 0x151   :  { %1702 = vmatpush3.xpose.msk.msra.mxu1 %vm155_vm1, %v152_v20 }
 0x154   :  { %1704 = vmatmul.mubr.msk.f32.vlgmr.msra.gmra.mxu1 %vm155_vm1, %v142_v21 }
 0x155   :  { %1717 = vmatprep.mubr.msk.f32.mxu1 %vm155_vm1, %v145_v22 }
 0x1b2   :  { %v244_v23 = vpop.permute.xlu1 %243  ;;  %v333_v24 = vpop.permute.xlu0 %332 }
 0x1b3   :  { %1706 = vmatprep.subr.msk.mxu0 %vm155_vm1, %v244_v23  ;;  %1713 = vmatprep.subr.msk.mxu1 %vm155_vm1, %v333_v24 }
 0x1b4   :  { %1707 = vmatpush3.xpose.msk.msra.mxu0 %vm155_vm1, %v244_v23  ;;  %1714 = vmatpush3.xpose.msk.msra.mxu1 %vm155_vm1, %v333_v24 }
 0x1b6   :  { %v242_v25 = vpop.permute.xlu1 %241 }
 0x1b7   :  { %1708 = vmatprep.subr.msk.mxu0 %vm155_vm1, %v242_v25 }
 0x1b8   :  { %1709 = vmatpush3.xpose.msk.msra.mxu0 %vm155_vm1, %v242_v25 }
 0x1ba   :  { %v422_v27 = vpop.permute.xlu1 %421  ;;  %v331_v28 = vpop.permute.xlu0 %330 }
 0x1bb   :  { %1711 = vmatmul.mubr.msk.f32.vlgmr.msra.gmra.mxu0 %vm155_vm1, %v144_v26  ;;  %1715 = vmatprep.subr.msk.mxu1 %vm155_vm1, %v331_v28 }
 0x1bc   :  { %1720 = vmatprep.subr.msk.mxu0 %vm155_vm1, %v422_v27  ;;  %1716 = vmatpush3.xpose.msk.msra.mxu1 %vm155_vm1, %v331_v28 }
 0x1bd   :  { %1721 = vmatpush3.xpose.msk.msra.mxu0 %vm155_vm1, %v422_v27  ;;  %1724 = vmatprep.mubr.msk.f32.mxu0 %vm155_vm1, %v147_v29 }
 0x1be   :  { %v420_v31 = vpop.permute.xlu1 %419 }
 0x1bf   :  { %1718 = vmatmul.mubr.msk.f32.vlgmr.msra.gmra.mxu1 %vm155_vm1, %v146_v30  ;;  %1722 = vmatprep.subr.msk.mxu0 %vm155_vm1, %v420_v31 }
 0x1c1   :  { %1723 = vmatpush3.xpose.msk.msra.mxu0 %vm155_vm1, %v420_v31 }
 0x1c4   :  { %1725 = vmatmul.mubr.msk.f32.vlgmr.msra.gmra.mxu0 %vm155_vm1, %v148_v32 }
 0x214   :  { %v1705_v34 = vpop.f32.mrf.mxu1 }
 0x215   :  { %v238_v36 = vadd.f32 %v1705_v34, %v150_v33 }
 0x216   :  { %v232_v37 = vpop.f32.mrf.mxu1 }
 0x217   :  { %v233_v38 = vadd.f32 %v232_v37, %v149_v35  ;;  %v512_v39 = vsel %vm508_vm2, %v238_v36, -inf }
 0x218   :  { %513 = vmax.xlane.f32.xlu1 %v512_v39 }
 0x219   :  { %v509_v40 = vsel %vm508_vm2, %v233_v38, -inf }
 0x21a   :  { %510 = vmax.xlane.f32.xlu0 %v509_v40 }
 0x27b   :  { %v1712_v41 = vpop.f32.mrf.mxu0 }
 0x27c   :  { %v327_v42 = vadd.f32 %v1712_v41, %v150_v33 }
 0x27d   :  { %v321_v43 = vpop.f32.mrf.mxu0 }
 0x27e   :  { %v322_v44 = vadd.f32 %v321_v43, %v149_v35  ;;  %v518_v45 = vsel %vm508_vm2, %v327_v42, -inf }
 0x27f   :  { %v1719_v46 = vpop.f32.mrf.mxu1  ;;  %519 = vmax.xlane.f32.xlu0 %v518_v45 }
 0x280   :  { %v416_v48 = vadd.f32 %v1719_v46, %v150_v33  ;;  %v515_v50 = vsel %vm508_vm2, %v322_v44, -inf }
 0x281   :  { %v410_v47 = vpop.f32.mrf.mxu1 }
 0x282   :  { %v411_v49 = vadd.f32 %v410_v47, %v149_v35  ;;  %v524_v55 = vsel %vm508_vm2, %v416_v48, -inf }
 0x283   :  { %516 = vmax.xlane.f32.xlu0 %v515_v50 }
 0x284   :  { %v1726_v51 = vpop.f32.mrf.mxu0  ;;  %v521_v52 = vsel %vm508_vm2, %v411_v49, -inf }
 0x285   :  { %522 = vmax.xlane.f32.xlu1 %v521_v52  ;;  %v505_v53 = vadd.f32 %v1726_v51, %v150_v33 }
 0x286   :  { %v499_v54 = vpop.f32.mrf.mxu0 }
 0x287   :  { %v500_v56 = vadd.f32 %v499_v54, %v149_v35  ;;  %525 = vmax.xlane.f32.xlu0 %v524_v55  ;;  %v530_v58 = vsel %vm508_vm2, %v505_v53, -inf }
 0x289   :  { %v527_v57 = vsel %vm508_vm2, %v500_v56, -inf }
 0x28a   :  { %528 = vmax.xlane.f32.xlu1 %v527_v57 }
 0x28b   :  { %531 = vmax.xlane.f32.xlu0 %v530_v58 }
 0x29b   :  { %607 = vrot.lane.b32.xlu1 %v1929_v8, %s1854_s1 }
 0x29f   :  { %694 = vrot.lane.b32.xlu1 %v1945_v13, %s1854_s1 }
 0x2a1   :  { %605 = vrot.lane.b32.xlu0 %v1931_v10, %s1854_s1  ;;  %v514_v59 = vpop.xlane.xlu1 %513 }
 0x2a2   :  { %v534_v60 = vsub.f32 %v238_v36, %v514_v59 }
 0x2a3   :  { %692 = vrot.lane.b32.xlu1 %v1949_v14, %s1854_s1  ;;  %v511_v62 = vpop.xlane.xlu0 %510 }
 0x2a4   :  { %v543_v61 = vmul.f32 1.442695, %v534_v60  ;;  %v533_v63 = vsub.f32 %v233_v38, %v511_v62 }
 0x2a5   :  { %781 = vrot.lane.b32.xlu0 %v1943_v12, %s1854_s1 }
 0x2a6   :  { %1810 = vpow2.f32 %v543_v61  ;;  %v541_v0 = vmul.f32 1.442695, %v533_v63 }
 0x2a7   :  { %779 = vrot.lane.b32.xlu1 %v1956_v17, %s1854_s1 }
 0x2a8   :  { %1812 = vpow2.f32 %v541_v0 }
 0x2b3   :  { %v2017_v1 = vpop.eup %1810 }
 0x2b4   :  { %v560_v3 = vsel %vm508_vm2, %v2017_v1, 0.0 }
 0x2b5   :  { %v2021_v4 = vpop.eup %1812 }
 0x2b6   :  { %v557_v6 = vsel %vm508_vm2, %v2021_v4, 0.0 }
 0x2c4   :  { %561 = vadd.xlane.f32.xlu0 %v560_v3 }
 0x2cb   :  { %558 = vadd.xlane.f32.xlu1 %v557_v6 }
 0x308   :  { %v520_v7 = vpop.xlane.xlu0 %519 }
 0x309   :  { %v536_v8 = vsub.f32 %v327_v42, %v520_v7 }
 0x30b   :  { %v547_v9 = vmul.f32 1.442695, %v536_v8  ;;  %v954_v8 = vld [vmem:[%s2205_s3 + $0x8] sm:$0xff] }
 0x30c   :  { %v517_v10 = vpop.xlane.xlu0 %516 }
 0x30d   :  { %1814 = vpow2.f32 %v547_v9  ;;  %v535_v11 = vsub.f32 %v322_v44, %v517_v10  ;;  %v955_v9 = vld [vmem:[%s2205_s3 + $0x10] sm:$0xff]  ;;  %v956_v10 = vld [vmem:[%s2205_s3 + $0x18] sm:$0xff] }
 0x30e   :  { %v523_v12 = vpop.xlane.xlu1 %522 }
 0x30f   :  { %v545_v13 = vmul.f32 1.442695, %v535_v11  ;;  %v537_v14 = vsub.f32 %v411_v49, %v523_v12 }
 0x310   :  { %v526_v15 = vpop.xlane.xlu0 %525 }
 0x311   :  { %1816 = vpow2.f32 %v545_v13  ;;  %v549_v17 = vmul.f32 1.442695, %v537_v14  ;;  %v538_v19 = vsub.f32 %v416_v48, %v526_v15 }
 0x313   :  { %1818 = vpow2.f32 %v549_v17  ;;  %v551_v20 = vmul.f32 1.442695, %v538_v19  ;;  %v529_v21 = vpop.xlane.xlu1 %528 }
 0x314   :  { %v539_v22 = vsub.f32 %v500_v56, %v529_v21  ;;  %v532_v23 = vpop.xlane.xlu0 %531 }
 0x315   :  { %1820 = vpow2.f32 %v551_v20  ;;  %v540_v24 = vsub.f32 %v505_v53, %v532_v23 }
 0x316   :  { %v553_v25 = vmul.f32 1.442695, %v539_v22 }
 0x317   :  { %v555_v26 = vmul.f32 1.442695, %v540_v24  ;;  %v608_v27 = vpop.permute.xlu1 %607 }
 0x318   :  { %1822 = vpow2.f32 %v553_v25  ;;  %1727 = vmatprep.subr.mxu0 %v608_v27  ;;  %v606_v28 = vpop.permute.xlu0 %605 }
 0x319   :  { %1824 = vpow2.f32 %v555_v26  ;;  %1728 = vmatpush3.msra.mxu0 %v608_v27 }
 0x31a   :  { %v2025_v29 = vpop.eup %1814  ;;  %1729 = vmatprep.subr.mxu0 %v606_v28 }
 0x31b   :  { %v695_v30 = vpop.permute.xlu1 %694  ;;  %1730 = vmatpush3.msra.mxu0 %v606_v28  ;;  %v566_v31 = vsel %vm508_vm2, %v2025_v29, 0.0 }
 0x31c   :  { %1734 = vmatprep.subr.mxu1 %v695_v30  ;;  %567 = vadd.xlane.f32.xlu0 %v566_v31  ;;  %v782_v32 = vpop.permute.xlu0 %781  ;;  %v1611_v31 = vld [vmem:[%s2202_s6 + $0x2] ss:$0 sm:$0xff] }
 0x31d   :  { %1735 = vmatpush3.msra.mxu1 %v695_v30  ;;  %1741 = vmatprep.subr.mxu0 %v782_v32 }
 0x31e   :  { %v1817_v33 = vpop.eup %1816 }
 0x31f   :  { %v693_v34 = vpop.permute.xlu1 %692  ;;  %v563_v35 = vsel %vm508_vm2, %v1817_v33, 0.0 }
 0x320   :  { %v2030_v36 = vpop.eup %1818  ;;  %1736 = vmatprep.subr.mxu1 %v693_v34  ;;  %564 = vadd.xlane.f32.xlu1 %v563_v35 }
 0x321   :  { %1737 = vmatpush3.msra.mxu1 %v693_v34  ;;  %v569_v38 = vsel %vm508_vm2, %v2030_v36, 0.0 }
 0x322   :  { %v1821_v37 = vpop.eup %1820 }
 0x323   :  { %v572_v39 = vsel %vm508_vm2, %v1821_v37, 0.0  ;;  %v780_v45 = vpop.permute.xlu1 %779 }
 0x324   :  { %570 = vadd.xlane.f32.xlu1 %v569_v38  ;;  %573 = vadd.xlane.f32.xlu0 %v572_v39 }
 0x325   :  { %v2035_v40 = vpop.eup %1822 }
 0x326   :  { %v2037_v41 = vpop.eup %1824  ;;  %v575_v42 = vsel %vm508_vm2, %v2035_v40, 0.0 }
 0x327   :  { %v578_v43 = vsel %vm508_vm2, %v2037_v41, 0.0 }
 0x328   :  { %576 = vadd.xlane.f32.xlu1 %v575_v42  ;;  %579 = vadd.xlane.f32.xlu0 %v578_v43 }
 0x339   :  { %866 = vrot.lane.b32.xlu1 %v1960_v18, %s1854_s1  ;;  %v953_v18 = vld [vmem:[%s2205_s3] sm:$0xff] }
 0x33e   :  { %868 = vrot.lane.b32.xlu0 %v1953_v16, %s1854_s1 }
 0x34d   :  { %v562_v44 = vpop.xlane.xlu0 %561 }
 0x34e   :  { %1826 = vrcp.f32 %v562_v44 }
 0x354   :  { %v559_v46 = vpop.xlane.xlu1 %558 }
 0x355   :  { %1828 = vrcp.f32 %v559_v46 }
 0x35b   :  { %v1827_v47 = vpop.eup %1826 }
 0x35c   :  { %v590_v48 = vmul.f32 %v1827_v47, %v2017_v1 }
 0x35e   :  { %598 = vst.msk [vmem:[%s2204_s8 + $0x8] sm:$0xff] %vm508_vm2, %v590_v48 }
 0x362   :  { %v1829_v49 = vpop.eup %1828 }
 0x363   :  { %v589_v50 = vmul.f32 %v1829_v49, %v2021_v4 }
 0x365   :  { %597 = vst.msk [vmem:[%s2204_s8] sm:$0xff] %vm508_vm2, %v589_v50  ;;  %1731 = vmatprep.mubr.msk.f32.mxu0 %vm508_vm2, %v589_v50 }
 0x366   :  { %1732 = vmatmul.mubr.msk.f32.vlgmr.msra.gmra.mxu0 %vm508_vm2, %v590_v48 }
 0x367   :  { %1742 = vmatpush3.msra.mxu0 %v782_v32 }
 0x368   :  { %1743 = vmatprep.subr.mxu0 %v780_v45 }
 0x369   :  { %1744 = vmatpush3.msra.mxu0 %v780_v45 }
 0x36a   :  { %1755 = vmatprep.subr.mxu0 %v953_v18 }
 0x3a5   :  { %v568_v16 = vpop.xlane.xlu0 %567 }
 0x3a6   :  { %1830 = vrcp.f32 %v568_v16 }
 0x3a9   :  { %v565_v51 = vpop.xlane.xlu1 %564 }
 0x3aa   :  { %1832 = vrcp.f32 %v565_v51 }
 0x3ad   :  { %v571_v52 = vpop.xlane.xlu1 %570  ;;  %v574_v53 = vpop.xlane.xlu0 %573 }
 0x3ae   :  { %1834 = vrcp.f32 %v571_v52 }
 0x3af   :  { %1836 = vrcp.f32 %v574_v53 }
 0x3b1   :  { %v577_v54 = vpop.xlane.xlu1 %576  ;;  %v580_v55 = vpop.xlane.xlu0 %579 }
 0x3b2   :  { %1838 = vrcp.f32 %v577_v54 }
 0x3b3   :  { %v1831_v56 = vpop.eup %1830  ;;  %1840 = vrcp.f32 %v580_v55  ;;  %v1612_v55 = vld [vmem:[%s2202_s6 + $0x3] ss:$0 sm:$0xff] }
 0x3b4   :  { %v592_v57 = vmul.f32 %v1831_v56, %v2025_v29 }
 0x3b5   :  { %v869_v58 = vpop.permute.xlu0 %868  ;;  %v867_v63 = vpop.permute.xlu1 %866 }
 0x3b6   :  { %1748 = vmatprep.subr.mxu1 %v869_v58  ;;  %600 = vst.msk [vmem:[%s2204_s8 + $0x18] sm:$0xff] %vm508_vm2, %v592_v57 }
 0x3b7   :  { %v1833_v59 = vpop.eup %1832 }
 0x3b8   :  { %v591_v60 = vmul.f32 %v1833_v59, %v1817_v33 }
 0x3ba   :  { %599 = vst.msk [vmem:[%s2204_s8 + $0x10] sm:$0xff] %vm508_vm2, %v591_v60  ;;  %1738 = vmatprep.mubr.msk.f32.mxu1 %vm508_vm2, %v591_v60 }
 0x3bb   :  { %v1835_v61 = vpop.eup %1834  ;;  %1739 = vmatmul.mubr.msk.f32.vlgmr.msra.gmra.mxu1 %vm508_vm2, %v592_v57  ;;  %v1613_v57 = vld [vmem:[%s2202_s6 + $0x4] ss:$0 sm:$0xff] }
 0x3bc   :  { %v1837_v62 = vpop.eup %1836  ;;  %1749 = vmatpush3.msra.mxu1 %v869_v58  ;;  %v593_v0 = vmul.f32 %v1835_v61, %v2030_v36 }
 0x3bd   :  { %1750 = vmatprep.subr.mxu1 %v867_v63  ;;  %v594_v1 = vmul.f32 %v1837_v62, %v1821_v37 }
 0x3be   :  { %1751 = vmatpush3.msra.mxu1 %v867_v63  ;;  %601 = vst.msk [vmem:[%s2204_s8 + $0x20] sm:$0xff] %vm508_vm2, %v593_v0  ;;  %1745 = vmatprep.mubr.msk.f32.mxu0 %vm508_vm2, %v593_v0 }
 0x3bf   :  { %v1839_v3 = vpop.eup %1838  ;;  %602 = vst.msk [vmem:[%s2204_s8 + $0x28] sm:$0xff] %vm508_vm2, %v594_v1  ;;  %1746 = vmatmul.mubr.msk.f32.vlgmr.msra.gmra.mxu0 %vm508_vm2, %v594_v1  ;;  %1760 = vmatprep.subr.mxu1 %v954_v8 }
 0x3c0   :  { %v1841_v4 = vpop.eup %1840  ;;  %v595_v6 = vmul.f32 %v1839_v3, %v2035_v40  ;;  %1756 = vmatpush3.msra.mxu0 %v953_v18 }
 0x3c1   :  { %v596_v7 = vmul.f32 %v1841_v4, %v2037_v41  ;;  %1765 = vmatprep.subr.mxu0 %v955_v9 }
 0x3c2   :  { %603 = vst.msk [vmem:[%s2204_s8 + $0x30] sm:$0xff] %vm508_vm2, %v595_v6  ;;  %1752 = vmatprep.mubr.msk.f32.mxu1 %vm508_vm2, %v595_v6 }
 0x3c3   :  { %604 = vst.msk [vmem:[%s2204_s8 + $0x38] sm:$0xff] %vm508_vm2, %v596_v7  ;;  %1753 = vmatmul.mubr.msk.f32.vlgmr.msra.gmra.mxu1 %vm508_vm2, %v596_v7 }
 0x3c4   :  { %1761 = vmatpush3.msra.mxu1 %v954_v8 }
 0x3c5   :  { %1770 = vmatprep.subr.mxu1 %v956_v10 }
 0x426   :  { %v1733_v11 = vpop.f32.mrf.mxu0 }
 0x428   :  { %v683_v12 = vpop.f32.mrf.mxu0 }
 0x429   :  { %1757 = vmatprep.mubr.msk.f32.mxu0 %vm155_vm1, %v683_v12 }
 0x42a   :  { %1758 = vmatmul.mubr.msk.f32.vlgmr.msra.gmra.mxu0 %vm155_vm1, %v1733_v11 }
 0x42b   :  { %1766 = vmatpush3.msra.mxu0 %v955_v9 }
 0x47b   :  { %v1740_v13 = vpop.f32.mrf.mxu1 }
 0x47d   :  { %v770_v14 = vpop.f32.mrf.mxu1 }
 0x47e   :  { %1762 = vmatprep.mubr.msk.f32.mxu1 %vm155_vm1, %v770_v14  ;;  %v1380_v14 = vld [vmem:[%s2206_s4 + $0x18] sm:$0xff] }
 0x47f   :  { %v1747_v15 = vpop.f32.mrf.mxu0  ;;  %1763 = vmatmul.mubr.msk.f32.vlgmr.msra.gmra.mxu1 %vm155_vm1, %v1740_v13  ;;  %1775 = vmatprep.subr.mxu0 %v1380_v14 }
 0x480   :  { %1771 = vmatpush3.msra.mxu1 %v956_v10 }
 0x481   :  { %v857_v17 = vpop.f32.mrf.mxu0 }
 0x482   :  { %1767 = vmatprep.mubr.msk.f32.mxu0 %vm155_vm1, %v857_v17  ;;  %v1378_v17 = vld [vmem:[%s2206_s4 + $0x8] sm:$0xff] }
 0x483   :  { %v1754_v19 = vpop.f32.mrf.mxu1  ;;  %1768 = vmatmul.mubr.msk.f32.vlgmr.msra.gmra.mxu0 %vm155_vm1, %v1747_v15  ;;  %v1379_v15 = vld [vmem:[%s2206_s4 + $0x10] sm:$0xff] }
 0x484   :  { %1776 = vmatpush3.msra.mxu0 %v1380_v14 }
 0x485   :  { %v944_v20 = vpop.f32.mrf.mxu1  ;;  %1777 = vmatprep.subr.mxu0 %v1379_v15 }
 0x486   :  { %1772 = vmatprep.mubr.msk.f32.mxu1 %vm155_vm1, %v944_v20  ;;  %1778 = vmatpush3.msra.mxu0 %v1379_v15  ;;  %v1476_v20 = vld [vmem:[%s2207_s5 + $0x38] sm:$0xff] }
 0x487   :  { %1773 = vmatmul.mubr.msk.f32.vlgmr.msra.gmra.mxu1 %vm155_vm1, %v1754_v19  ;;  %1779 = vmatprep.subr.mxu0 %v1378_v17  ;;  %v1377_v19 = vld [vmem:[%s2206_s4] sm:$0xff] }
 0x488   :  { %1780 = vmatpush3.msra.mxu0 %v1378_v17  ;;  %1786 = vmatprep.subr.mxu1 %v1476_v20 }
 0x489   :  { %1781 = vmatprep.subr.mxu0 %v1377_v19  ;;  %1787 = vmatpush3.msra.mxu1 %v1476_v20 }
 0x48a   :  { %1782 = vmatpush3.msra.mxu0 %v1377_v19 }
 0x4ea   :  { %v1759_v21 = vpop.f32.mrf.mxu0 }
 0x4ec   :  { %v1029_v23 = vpop.f32.mrf.mxu0 }
 0x53f   :  { %v1764_v22 = vpop.f32.mrf.mxu1 }
 0x540   :  { %v1282_v26 = vadd.f32 %v1764_v22, %v1759_v21  ;;  %v1475_v21 = vld [vmem:[%s2207_s5 + $0x30] sm:$0xff]  ;;  %v1474_v22 = vld [vmem:[%s2207_s5 + $0x28] sm:$0xff] }
 0x541   :  { %v1110_v24 = vpop.f32.mrf.mxu1  ;;  %1788 = vmatprep.subr.mxu1 %v1475_v21 }
 0x542   :  { %v1281_v28 = vadd.f32 %v1110_v24, %v1029_v23  ;;  %1789 = vmatpush3.msra.mxu1 %v1475_v21  ;;  %v1473_v23 = vld [vmem:[%s2207_s5 + $0x20] sm:$0xff] }
 0x543   :  { %v1769_v25 = vpop.f32.mrf.mxu0  ;;  %1790 = vmatprep.subr.mxu1 %v1474_v22 }
 0x544   :  { %v1284_v29 = vadd.f32 %v1769_v25, %v1282_v26  ;;  %1791 = vmatpush3.msra.mxu1 %v1474_v22 }
 0x545   :  { %v1191_v27 = vpop.f32.mrf.mxu0  ;;  %1792 = vmatprep.subr.mxu1 %v1473_v23 }
 0x546   :  { %v1283_v32 = vadd.f32 %v1281_v28, %v1191_v27  ;;  %1793 = vmatpush3.msra.mxu1 %v1473_v23 }
 0x547   :  { %v1774_v30 = vpop.f32.mrf.mxu1 }
 0x548   :  { %v1286_v33 = vadd.f32 %v1774_v30, %v1284_v29 }
 0x549   :  { %v1272_v34 = vpop.f32.mrf.mxu1 }
 0x54a   :  { %v1293_v35 = vadd.f32 %v1611_v31, %v1286_v33  ;;  %v1285_v36 = vadd.f32 %v1283_v32, %v1272_v34  ;;  %v1615_v33 = vld [vmem:[%s2202_s6 + $0x6] ss:$0 sm:$0xff] }
 0x54c   :  { %v1292_v37 = vadd.f32 %v1611_v31, %v1285_v36  ;;  %v1295_v38 = vadd.f32 %v1293_v35, %v1922_v5  ;;  %v1614_v31 = vld [vmem:[%s2202_s6 + $0x5] ss:$0 sm:$0xff] }
 0x54e   :  { %v1299_v39 = vsel %vm39_vm0, %v1295_v38, 0.0  ;;  %v1294_v40 = vadd.f32 %v1292_v37, %v1909_v2 }
 0x54f   :  { %1300 = vadd.xlane.f32.xlu1 %v1299_v39 }
 0x550   :  { %v1296_v41 = vsel %vm39_vm0, %v1294_v40, 0.0 }
 0x551   :  { %1297 = vadd.xlane.f32.xlu0 %v1296_v41  ;;  %v1471_v41 = vld [vmem:[%s2207_s5 + $0x10] sm:$0xff] }
 0x5d8   :  { %v1301_v42 = vpop.xlane.xlu1 %1300 }
 0x5d9   :  { %v1304_v43 = vmul.f32 0.03125, %v1301_v42  ;;  %v1470_v42 = vld [vmem:[%s2207_s5 + $0x8] sm:$0xff] }
 0x5da   :  { %v1298_v44 = vpop.xlane.xlu0 %1297 }
 0x5db   :  { %v1303_v45 = vmul.f32 0.03125, %v1298_v44  ;;  %v1306_v46 = vsub.f32 %v1295_v38, %v1304_v43  ;;  %v1469_v43 = vld [vmem:[%s2207_s5] sm:$0xff] }
 0x5dc   :  { %v1616_v44 = vld [vmem:[%s2202_s6 + $0x1] ss:$0 sm:$0xff] }
 0x5dd   :  { %v1305_v47 = vsub.f32 %v1294_v40, %v1303_v45  ;;  %v1308_v50 = vmul.f32 %v1306_v46, %v1306_v46  ;;  %v1472_v40 = vld [vmem:[%s2207_s5 + $0x18] sm:$0xff] }
 0x5de   :  { %1794 = vmatprep.subr.mxu1 %v1472_v40 }
 0x5df   :  { %v1307_v48 = vmul.f32 %v1305_v47, %v1305_v47  ;;  %v1312_v5 = vsel %vm39_vm0, %v1308_v50, 0.0  ;;  %1795 = vmatpush3.msra.mxu1 %v1472_v40 }
 0x5e0   :  { %1796 = vmatprep.subr.mxu1 %v1471_v41 }
 0x5e1   :  { %v1309_v49 = vsel %vm39_vm0, %v1307_v48, 0.0  ;;  %1797 = vmatpush3.msra.mxu1 %v1471_v41 }
 0x5e2   :  { %1310 = vadd.xlane.f32.xlu0 %v1309_v49  ;;  %1798 = vmatprep.subr.mxu1 %v1470_v42 }
 0x5e3   :  { %1799 = vmatpush3.msra.mxu1 %v1470_v42 }
 0x5e4   :  { %1800 = vmatprep.subr.mxu1 %v1469_v43 }
 0x5e5   :  { %1801 = vmatpush3.msra.mxu1 %v1469_v43 }
 0x5e6   :  { %1313 = vadd.xlane.f32.xlu0 %v1312_v5  ;;  %v1619_v5 = vld [vmem:[%s2202_s6 + $0x7] ss:$0 sm:$0xff] }
 0x66b   :  { %v1311_v16 = vpop.xlane.xlu0 %1310 }
 0x66c   :  { %v1315_v2 = vmul.f32 0.03125, %v1311_v16 }
 0x66e   :  { %v1317_v18 = vadd.f32 1e-06, %v1315_v2 }
 0x66f   :  { %v1314_v51 = vpop.xlane.xlu0 %1313 }
 0x670   :  { %1842 = vrsqrt.f32 %v1317_v18  ;;  %v1316_v52 = vmul.f32 0.03125, %v1314_v51 }
 0x672   :  { %v1318_v53 = vadd.f32 1e-06, %v1316_v52 }
 0x674   :  { %1844 = vrsqrt.f32 %v1318_v53 }
 0x67d   :  { %v1843_v54 = vpop.eup %1842 }
 0x67e   :  { %v1321_v56 = vmul.f32 %v1843_v54, %v1305_v47 }
 0x680   :  { %v1328_v58 = vmul.f32 %v1612_v55, %v1321_v56 }
 0x681   :  { %v1845_v59 = vpop.eup %1844 }
 0x682   :  { %v2128_v60 = vadd.f32 %v1613_v57, %v1328_v58  ;;  %v1322_v61 = vmul.f32 %v1845_v59, %v1306_v46 }
 0x684   :  { %v1337_v62 = vsel %vm39_vm0, %v2128_v60, 0.0  ;;  %v1329_v63 = vmul.f32 %v1612_v55, %v1322_v61 }
 0x685   :  { %1338 = vadd.xlane.f32.xlu1 %v1337_v62 }
 0x686   :  { %v2132_v0 = vadd.f32 %v1613_v57, %v1329_v63 }
 0x688   :  { %v1340_v1 = vsel %vm39_vm0, %v2132_v0, 0.0 }
 0x689   :  { %1341 = vadd.xlane.f32.xlu0 %v1340_v1 }
 0x70e   :  { %v1339_v3 = vpop.xlane.xlu1 %1338 }
 0x70f   :  { %v1343_v4 = vmul.f32 0.03125, %v1339_v3 }
 0x711   :  { %v1345_v6 = vsub.f32 %v2128_v60, %v1343_v4 }
 0x712   :  { %v1342_v7 = vpop.xlane.xlu0 %1341 }
 0x713   :  { %v1344_v8 = vmul.f32 0.03125, %v1342_v7  ;;  %v1347_v9 = vmul.f32 %v1345_v6, %v1345_v6 }
 0x715   :  { %v1346_v10 = vsub.f32 %v2132_v0, %v1344_v8  ;;  %v1349_v11 = vsel %vm39_vm0, %v1347_v9, 0.0 }
 0x716   :  { %1350 = vadd.xlane.f32.xlu1 %v1349_v11 }
 0x717   :  { %v1348_v12 = vmul.f32 %v1346_v10, %v1346_v10 }
 0x719   :  { %v1352_v13 = vsel %vm39_vm0, %v1348_v12, 0.0 }
 0x71a   :  { %1353 = vadd.xlane.f32.xlu0 %v1352_v13 }
 0x79f   :  { %v1351_v24 = vpop.xlane.xlu1 %1350 }
 0x7a0   :  { %v1355_v25 = vmul.f32 0.03125, %v1351_v24 }
 0x7a2   :  { %v1357_v26 = vadd.f32 1e-06, %v1355_v25 }
 0x7a3   :  { %v1354_v27 = vpop.xlane.xlu0 %1353 }
 0x7a4   :  { %1846 = vrsqrt.f32 %v1357_v26  ;;  %v1356_v28 = vmul.f32 0.03125, %v1354_v27 }
 0x7a6   :  { %v1358_v29 = vadd.f32 1e-06, %v1356_v28 }
 0x7a8   :  { %1848 = vrsqrt.f32 %v1358_v29 }
 0x7b1   :  { %v1847_v30 = vpop.eup %1846 }
 0x7b2   :  { %v1361_v32 = vmul.f32 %v1847_v30, %v1345_v6 }
 0x7b4   :  { %v1368_v34 = vmul.f32 %v1614_v31, %v1361_v32 }
 0x7b5   :  { %v1849_v35 = vpop.eup %1848 }
 0x7b6   :  { %v1362_v36 = vmul.f32 %v1849_v35, %v1346_v10  ;;  %v1375_v37 = vadd.f32 %v1615_v33, %v1368_v34 }
 0x7b8   :  { %v1369_v38 = vmul.f32 %v1614_v31, %v1362_v36  ;;  %1783 = vmatprep.mubr.msk.f32.mxu0 %vm39_vm0, %v1375_v37 }
 0x7ba   :  { %v1376_v39 = vadd.f32 %v1615_v33, %v1369_v38 }
 0x7bc   :  { %1784 = vmatmul.mubr.msk.f32.vlgmr.msra.gmra.mxu0 %vm39_vm0, %v1376_v39 }
 0x87c   :  { %v1785_v45 = vpop.f32.mrf.mxu0 }
 0x87d   :  { %v1464_v46 = vadd.f32 %v1785_v45, %v1616_v44 }
 0x87e   :  { %v1458_v47 = vpop.f32.mrf.mxu0 }
 0x87f   :  { %v1459_v48 = vadd.f32 %v1616_v44, %v1458_v47  ;;  %v1468_v50 = vmax.f32 %v1464_v46, 0.0 }
 0x881   :  { %v1467_v49 = vmax.f32 %v1459_v48, 0.0 }
 0x883   :  { %1802 = vmatprep.mubr.msk.f32.mxu1 %vm1482_vm3, %v1467_v49 }
 0x884   :  { %1803 = vmatmul.mubr.msk.f32.vlgmr.msra.gmra.mxu1 %vm1482_vm3, %v1468_v50 }
 0x944   :  { %v1804_v16 = vpop.f32.mrf.mxu1 }
 0x945   :  { %v1561_v2 = vadd.f32 %v1804_v16, %v1619_v5 }
 0x946   :  { %v1555_v18 = vpop.f32.mrf.mxu1 }
 0x947   :  { %v1565_v51 = vadd.f32 %v1561_v2, %v2132_v0  ;;  %v1556_v52 = vadd.f32 %v1619_v5, %v1555_v18 }
 0x949   :  { %1567 = vst.msk [vmem:[%s2208_s7 + $0x8] sm:$0xff] %vm39_vm0, %v1565_v51  ;;  %v1564_v53 = vadd.f32 %v1556_v52, %v2128_v60 }
 0x94b   :  { %1566 = vst.msk [vmem:[%s2208_s7] sm:$0xff] %vm39_vm0, %v1564_v53 }

</bundles_post_ra>
